<compile_context>
chip_gen: v5e
topology: v5e:2x2
jax: 0.10.0
libtpu: 0.0.40
codegen_flags: <defaults>
</compile_context>

<pallas_src>
import jax
import jax.numpy as jnp
import numpy as np
from jax import lax
from jax.experimental import pallas as pl
from jax.experimental.pallas import tpu as pltpu


# ----------------------------------------------------------------------------
# Fused Pallas kernel (LSTM stack + FC head)
# ----------------------------------------------------------------------------
def _make_fused_kernel(num_layers, num_fc, T, B_pad, B_real, H):
    """Builds the fused kernel.

    Ref order: x_flat, lstm params (wih, whh, b)*L, fc params (w, b, gamma,
    beta)*F, final linear (w, b), output, [hseq scratch].
    x_flat is time-major, batch-padded: (T * B_pad, Din).
    """

    def kernel(*refs):
        idx = 0
        x_ref = refs[idx]
        idx += 1
        lstm_params = [
            (refs[idx + 3 * l], refs[idx + 3 * l + 1], refs[idx + 3 * l + 2])
            for l in range(num_layers)
        ]
        idx += 3 * num_layers
        fc_params = [
            (refs[idx + 4 * l], refs[idx + 4 * l + 1],
             refs[idx + 4 * l + 2], refs[idx + 4 * l + 3])
            for l in range(num_fc)
        ]
        idx += 4 * num_fc
        wlast_ref = refs[idx]
        blast_ref = refs[idx + 1]
        idx += 2
        out_ref = refs[idx]
        idx += 1
        hseq_ref = refs[idx] if num_layers > 1 else None  # VMEM (T, B_pad, H)

        # ---- hoisted lane/row masks (outside all loops) -------------------
        # g-gate lanes [2H, 3H) of the full-width (B_pad, 4H) gate vector.
        lane = lax.broadcasted_iota(jnp.int32, (B_pad, 4 * H), 1)
        g_mask = jnp.logical_and(lane >= 2 * H, lane < 3 * H)
        # valid (non-padded) batch rows, for the BatchNorm statistics.
        row = lax.broadcasted_iota(jnp.int32, (B_pad, 1), 0)
        valid = (row < B_real).astype(jnp.float32)           # (B_pad, 1)
        inv_n = jnp.float32(1.0 / B_real)

        def run_lstm_layer(seq_flat, wih_ref, whh_ref, b_ref, write_seq):
            """seq_flat: (T*B_pad, D_in) value, time-major."""
            # Hoisted input projection + bias: ONE MXU matmul for all T steps,
            # reshaped so the time loop indexes the leading axis cleanly.
            gx = (jnp.dot(seq_flat, wih_ref[...],
                          preferred_element_type=jnp.float32)
                  + b_ref[...]).reshape(T, B_pad, 4 * H)
            # Small at H=32; for large H index whh_ref inside the loop instead.
            whh = whh_ref[...]                                 # (H, 4H)
            h = jnp.zeros((B_pad, H), jnp.float32)
            c = jnp.zeros((B_pad, H), jnp.float32)
            # Static unroll: T known at trace time and small.  For large T use
            # lax.fori_loop(..., unroll=4..8) with gx in a VMEM scratch.
            for t in range(T):
                gates = gx[t] + jnp.dot(h, whh,
                                        preferred_element_type=jnp.float32)
                # Full-width activations: 2 EUP pushes per step instead of 4
                # sub-vreg ones; select the tanh lanes for gate g.
                acts = jnp.where(g_mask, jnp.tanh(gates), jax.nn.sigmoid(gates))
                i = acts[:, 0:H]
                f = acts[:, H:2 * H]
                g = acts[:, 2 * H:3 * H]
                o = acts[:, 3 * H:4 * H]
                c = f * c + i * g
                h = o * jnp.tanh(c)
                if write_seq:
                    # Leading-dim (time) store into the VMEM scratch, never HBM.
                    hseq_ref[t] = h
            return h  # h_T, (B_pad, H)

        # ---- LSTM stack ----------------------------------------------------
        seq_flat = x_ref[...]                                  # (T*B_pad, Din)
        h_T = None
        for l, (wih_ref, whh_ref, b_ref) in enumerate(lstm_params):
            is_last = (l == num_layers - 1)
            h_T = run_lstm_layer(seq_flat, wih_ref, whh_ref, b_ref,
                                 write_seq=not is_last)
            if not is_last:
                # Fine at toy sizes; for large T*B*H feed the next layer
                # chunk-by-chunk from the scratch instead of materializing.
                seq_flat = hseq_ref[...].reshape(T * B_pad, H)

        # ---- FC head: [Linear -> BatchNorm1d(batch stats) -> ReLU]* ---------
        out = h_T                                              # (B_pad, H)
        for (w_ref, b_ref, gamma_ref, beta_ref) in fc_params:
            y = (jnp.dot(out, w_ref[...],
                         preferred_element_type=jnp.float32) + b_ref[...])
            # Masked batch statistics: padded rows must not contribute.
            mean = jnp.sum(y * valid, axis=0, keepdims=True) * inv_n
            d = (y - mean) * valid
            var = jnp.sum(d * d, axis=0, keepdims=True) * inv_n   # biased
            y = (y - mean) * lax.rsqrt(var + 1e-5)
            out = jnp.maximum(y * gamma_ref[...] + beta_ref[...], 0.0)

        # ---- final Linear(., 1) ---------------------------------------------
        out_ref[...] = (jnp.dot(out, wlast_ref[...],
                                preferred_element_type=jnp.float32)
                        + blast_ref[...])

    return kernel


# ----------------------------------------------------------------------------
# Wrapper
# ----------------------------------------------------------------------------
def lstm_model_forward(x, params):
    """x: (B, T, input_size) batch-first, matching the PyTorch module."""
    B, T, Din = x.shape
    H = params["lstm"][0][1].shape[0]
    num_layers = len(params["lstm"])
    fc_blocks = params["fc_blocks"]
    num_fc = len(fc_blocks)
    w_last, b_last = params["fc_last"]

    # Pad batch to a multiple of 8 (f32 sublane count) and go time-major.
    # Fused pad+transpose in XLA; inside the kernel every row slice is then a
    # full (8,128)-tile access.
    B_pad = max(8, ((B + 7) // 8) * 8)
    x_tm = jnp.transpose(x, (1, 0, 2)).astype(jnp.float32)        # (T, B, Din)
    if B_pad != B:
        x_tm = jnp.pad(x_tm, ((0, 0), (0, B_pad - B), (0, 0)))
    x_flat = x_tm.reshape(T * B_pad, Din)

    inputs = [x_flat]
    for p in params["lstm"]:
        inputs.extend(p)
    for p in fc_blocks:
        inputs.extend(p)
    inputs.extend([w_last, b_last])

    vmem_spec = pl.BlockSpec(memory_space=pltpu.MemorySpace.VMEM)
    scratch_shapes = []
    if num_layers > 1:
        scratch_shapes.append(pltpu.VMEM((T, B_pad, H), jnp.float32))

    # Explicit VMEM budget: everything is resident (no grid), so size the
    # scoped limit to the footprint (inputs + output + hseq scratch + gx /
    # activation temporaries) with headroom instead of relying on defaults.
    def _nbytes(a):
        return int(a.size) * a.dtype.itemsize
    resident = sum(_nbytes(a) for a in inputs)
    resident += B_pad * 1 * 4                                   # output
    if num_layers > 1:
        resident += T * B_pad * H * 4                           # hseq scratch
    resident += 3 * (T * B_pad * 4 * H * 4)                     # gx + temps
    vmem_limit = int(min(max(2 * resident + (2 << 20), 16 << 20), 64 << 20))

    kernel = _make_fused_kernel(num_layers, num_fc, T, B_pad, B, H)
    out_padded = pl.pallas_call(
        kernel,
        out_shape=jax.ShapeDtypeStruct((B_pad, 1), jnp.float32),
        in_specs=[vmem_spec] * len(inputs),
        out_specs=vmem_spec,
        scratch_shapes=scratch_shapes,
        compiler_params=pltpu.CompilerParams(vmem_limit_bytes=vmem_limit),
    )(*inputs)
    return out_padded[:B]


lstm_model_forward_jit = jax.jit(lstm_model_forward)


# ----------------------------------------------------------------------------
# Pure-JAX reference (for correctness check)
# ----------------------------------------------------------------------------
def reference_forward(x, params):
    seq = jnp.transpose(x, (1, 0, 2)).astype(jnp.float32)
    for (wih_t, whh_t, b) in params["lstm"]:
        H = whh_t.shape[0]
        B = seq.shape[1]

        def step(carry, x_t):
            h, c = carry
            gates = x_t @ wih_t + h @ whh_t + b
            i = jax.nn.sigmoid(gates[:, 0:H])
            f = jax.nn.sigmoid(gates[:, H:2 * H])
            g = jnp.tanh(gates[:, 2 * H:3 * H])
            o = jax.nn.sigmoid(gates[:, 3 * H:4 * H])
            c_new = f * c + i * g
            h_new = o * jnp.tanh(c_new)
            return (h_new, c_new), h_new

        (_, _), hs = lax.scan(step, (jnp.zeros((B, H)), jnp.zeros((B, H))), seq)
        seq = hs
    out = seq[-1]
    for (w, b, gamma, beta) in params["fc_blocks"]:
        y = out @ w + b
        mean = jnp.mean(y, axis=0, keepdims=True)
        var = jnp.mean((y - mean) ** 2, axis=0, keepdims=True)
        y = (y - mean) * lax.rsqrt(var + 1e-5) * gamma + beta
        out = jnp.maximum(y, 0.0)
    w_last, b_last = params["fc_last"]
    return out @ w_last + b_last


# ----------------------------------------------------------------------------
# Deterministic parameter init (shapes follow the PyTorch module __init__)
# ----------------------------------------------------------------------------
def init_params(key, input_size, hidden_size, num_layers, fc_layers):
    params = {"lstm": [], "fc_blocks": []}
    d_in = input_size
    k_lstm = 1.0 / np.sqrt(hidden_size)
    for _ in range(num_layers):
        key, k1, k2, k3, k4 = jax.random.split(key, 5)
        w_ih = jax.random.uniform(k1, (4 * hidden_size, d_in), jnp.float32, -k_lstm, k_lstm)
        w_hh = jax.random.uniform(k2, (4 * hidden_size, hidden_size), jnp.float32, -k_lstm, k_lstm)
        b_ih = jax.random.uniform(k3, (4 * hidden_size,), jnp.float32, -k_lstm, k_lstm)
        b_hh = jax.random.uniform(k4, (4 * hidden_size,), jnp.float32, -k_lstm, k_lstm)
        params["lstm"].append((w_ih.T, w_hh.T, (b_ih + b_hh)[None, :]))
        d_in = hidden_size

    d = hidden_size
    for layer in fc_layers:
        key, k1, k2 = jax.random.split(key, 3)
        bound = 1.0 / np.sqrt(d)
        w = jax.random.uniform(k1, (layer, d), jnp.float32, -bound, bound)
        b = jax.random.uniform(k2, (layer,), jnp.float32, -bound, bound)
        gamma = jnp.ones((1, layer), jnp.float32)
        beta = jnp.zeros((1, layer), jnp.float32)
        params["fc_blocks"].append((w.T, b[None, :], gamma, beta))
        d = layer

    key, k1, k2 = jax.random.split(key, 3)
    bound = 1.0 / np.sqrt(d)
    w = jax.random.uniform(k1, (1, d), jnp.float32, -bound, bound)
    b = jax.random.uniform(k2, (1,), jnp.float32, -bound, bound)
    params["fc_last"] = (w.T, b[None, :])
    return params


if __name__ == "__main__":
    # Small shapes consistent with the module's forward: x is (batch, seq, input_size).
    batch, seq_len, input_size = 4, 8, 16          # batch=4 exercises padding to 8
    hidden_size, num_layers = 32, 2
    fc_layers = [32, 16]

    key = jax.random.PRNGKey(0)
    key, kx, kp = jax.random.split(key, 3)
    x = jax.random.normal(kx, (batch, seq_len, input_size), jnp.float32)
    params = init_params(kp, input_size, hidden_size, num_layers, fc_layers)

    out = lstm_model_forward_jit(x, params)
    out = jax.block_until_ready(out)

    ref = jax.block_until_ready(reference_forward(x, params))
    assert out.shape == (batch, 1), out.shape
    np.testing.assert_allclose(np.asarray(out), np.asarray(ref), rtol=1e-3, atol=1e-3)

    print("KERNEL_OK")
</pallas_src>

<mosaic_0001>
module attributes {stable_mosaic.version = 11 : i64} {
  func.func @kernel(%arg0: memref<64x16xf32, #tpu.memory_space<vmem>>, %arg1: memref<16x128xf32, #tpu.memory_space<vmem>>, %arg2: memref<32x128xf32, #tpu.memory_space<vmem>>, %arg3: memref<1x128xf32, #tpu.memory_space<vmem>>, %arg4: memref<32x128xf32, #tpu.memory_space<vmem>>, %arg5: memref<32x128xf32, #tpu.memory_space<vmem>>, %arg6: memref<1x128xf32, #tpu.memory_space<vmem>>, %arg7: memref<32x32xf32, #tpu.memory_space<vmem>>, %arg8: memref<1x32xf32, #tpu.memory_space<vmem>>, %arg9: memref<1x32xf32, #tpu.memory_space<vmem>>, %arg10: memref<1x32xf32, #tpu.memory_space<vmem>>, %arg11: memref<32x16xf32, #tpu.memory_space<vmem>>, %arg12: memref<1x16xf32, #tpu.memory_space<vmem>>, %arg13: memref<1x16xf32, #tpu.memory_space<vmem>>, %arg14: memref<1x16xf32, #tpu.memory_space<vmem>>, %arg15: memref<16x1xf32, #tpu.memory_space<vmem>>, %arg16: memref<1x1xf32, #tpu.memory_space<vmem>>, %arg17: memref<8x1xf32, #tpu.memory_space<vmem>>, %arg18: memref<8x8x32xf32, #tpu.memory_space<vmem>>) attributes {dimension_semantics = [], scalar_prefetch = 0 : i64, scratch_operands = 1 : i64, tpu.core_type = #tpu.core_type<tc>} {
    %0 = tpu.iota {dimensions = array<i32: 1>} : vector<8x128xi32>
    %c64_i32 = arith.constant 64 : i32
    %1 = vector.broadcast %c64_i32 : i32 to vector<8x128xi32>
    %2 = arith.cmpi sge, %0, %1 : vector<8x128xi32>
    %c96_i32 = arith.constant 96 : i32
    %3 = vector.broadcast %c96_i32 : i32 to vector<8x128xi32>
    %4 = arith.cmpi slt, %0, %3 : vector<8x128xi32>
    %5 = arith.andi %2, %4 : vector<8x128xi1>
    %6 = tpu.iota {dimensions = array<i32: 0>} : vector<8x1xi32>
    %c4_i32 = arith.constant 4 : i32
    %7 = vector.broadcast %c4_i32 : i32 to vector<8x1xi32>
    %8 = arith.cmpi slt, %6, %7 : vector<8x1xi32>
    %9 = arith.extui %8 : vector<8x1xi1> to vector<8x1xi32>
    %10 = arith.sitofp %9 : vector<8x1xi32> to vector<8x1xf32>
    %c0 = arith.constant 0 : index
    %c0_0 = arith.constant 0 : index
    %11 = vector.load %arg0[%c0, %c0_0] : memref<64x16xf32, #tpu.memory_space<vmem>>, vector<64x16xf32>
    %c0_1 = arith.constant 0 : index
    %c0_2 = arith.constant 0 : index
    %12 = vector.load %arg1[%c0_1, %c0_2] : memref<16x128xf32, #tpu.memory_space<vmem>>, vector<16x128xf32>
    %cst = arith.constant dense<0.000000e+00> : vector<64x128xf32>
    %13 = tpu.matmul %11, %12, %cst {dimension_numbers = #tpu.dot_dimension_numbers<[1], [0], [0], [1], [0, 0, 1, 1], [], []>} : vector<64x16xf32>, vector<16x128xf32>, vector<64x128xf32> -> vector<64x128xf32>
    %c0_3 = arith.constant 0 : index
    %c0_4 = arith.constant 0 : index
    %14 = vector.load %arg3[%c0_3, %c0_4] : memref<1x128xf32, #tpu.memory_space<vmem>>, vector<1x128xf32>
    %15 = vector.broadcast %14 : vector<1x128xf32> to vector<64x128xf32>
    %16 = arith.addf %13, %15 : vector<64x128xf32>
    %17 = vector.shape_cast %16 : vector<64x128xf32> to vector<8x8x128xf32>
    %c0_5 = arith.constant 0 : index
    %c0_6 = arith.constant 0 : index
    %18 = vector.load %arg2[%c0_5, %c0_6] : memref<32x128xf32, #tpu.memory_space<vmem>>, vector<32x128xf32>
    %cst_7 = arith.constant 0.000000e+00 : f32
    %19 = vector.broadcast %cst_7 : f32 to vector<8x32xf32>
    %cst_8 = arith.constant 0.000000e+00 : f32
    %20 = vector.broadcast %cst_8 : f32 to vector<8x32xf32>
    %21 = vector.extract_strided_slice %17 {offsets = [0, 0, 0], sizes = [1, 8, 128], strides = [1, 1, 1]} : vector<8x8x128xf32> to vector<1x8x128xf32>
    %22 = vector.shape_cast %21 : vector<1x8x128xf32> to vector<8x128xf32>
    %cst_9 = arith.constant dense<0.000000e+00> : vector<8x128xf32>
    %23 = tpu.matmul %19, %18, %cst_9 {dimension_numbers = #tpu.dot_dimension_numbers<[1], [0], [0], [1], [0, 0, 1, 1], [], []>} : vector<8x32xf32>, vector<32x128xf32>, vector<8x128xf32> -> vector<8x128xf32>
    %24 = arith.addf %22, %23 : vector<8x128xf32>
    %25 = math.tanh %24 : vector<8x128xf32>
    %26 = arith.negf %24 : vector<8x128xf32>
    %27 = math.exp %26 : vector<8x128xf32>
    %cst_10 = arith.constant 1.000000e+00 : f32
    %28 = vector.broadcast %cst_10 : f32 to vector<8x128xf32>
    %29 = arith.addf %28, %27 : vector<8x128xf32>
    %30 = arith.divf %28, %29 : vector<8x128xf32>
    %31 = arith.select %5, %25, %30 : vector<8x128xi1>, vector<8x128xf32>
    %32 = vector.extract_strided_slice %31 {offsets = [0, 0], sizes = [8, 32], strides = [1, 1]} : vector<8x128xf32> to vector<8x32xf32>
    %33 = vector.extract_strided_slice %31 {offsets = [0, 32], sizes = [8, 32], strides = [1, 1]} : vector<8x128xf32> to vector<8x32xf32>
    %34 = vector.extract_strided_slice %31 {offsets = [0, 64], sizes = [8, 32], strides = [1, 1]} : vector<8x128xf32> to vector<8x32xf32>
    %35 = vector.extract_strided_slice %31 {offsets = [0, 96], sizes = [8, 32], strides = [1, 1]} : vector<8x128xf32> to vector<8x32xf32>
    %36 = arith.mulf %33, %20 : vector<8x32xf32>
    %37 = arith.mulf %32, %34 : vector<8x32xf32>
    %38 = arith.addf %36, %37 : vector<8x32xf32>
    %39 = math.tanh %38 : vector<8x32xf32>
    %40 = arith.mulf %35, %39 : vector<8x32xf32>
    %c0_11 = arith.constant 0 : index
    %c0_12 = arith.constant 0 : index
    %c0_13 = arith.constant 0 : index
    %41 = vector.load %arg18[%c0_11, %c0_12, %c0_13] : memref<8x8x32xf32, #tpu.memory_space<vmem>>, vector<1x8x32xf32>
    %42 = vector.shape_cast %41 : vector<1x8x32xf32> to vector<8x32xf32>
    %43 = vector.shape_cast %40 : vector<8x32xf32> to vector<1x8x32xf32>
    tpu.vector_store %arg18[%c0_11, %c0_12, %c0_13], %43 {strides = array<i32>} : memref<8x8x32xf32, #tpu.memory_space<vmem>>, vector<1x8x32xf32>,
    %44 = vector.extract_strided_slice %17 {offsets = [1, 0, 0], sizes = [1, 8, 128], strides = [1, 1, 1]} : vector<8x8x128xf32> to vector<1x8x128xf32>
    %45 = vector.shape_cast %44 : vector<1x8x128xf32> to vector<8x128xf32>
    %cst_14 = arith.constant dense<0.000000e+00> : vector<8x128xf32>
    %46 = tpu.matmul %40, %18, %cst_14 {dimension_numbers = #tpu.dot_dimension_numbers<[1], [0], [0], [1], [0, 0, 1, 1], [], []>} : vector<8x32xf32>, vector<32x128xf32>, vector<8x128xf32> -> vector<8x128xf32>
    %47 = arith.addf %45, %46 : vector<8x128xf32>
    %48 = math.tanh %47 : vector<8x128xf32>
    %49 = arith.negf %47 : vector<8x128xf32>
    %50 = math.exp %49 : vector<8x128xf32>
    %cst_15 = arith.constant 1.000000e+00 : f32
    %51 = vector.broadcast %cst_15 : f32 to vector<8x128xf32>
    %52 = arith.addf %51, %50 : vector<8x128xf32>
    %53 = arith.divf %51, %52 : vector<8x128xf32>
    %54 = arith.select %5, %48, %53 : vector<8x128xi1>, vector<8x128xf32>
    %55 = vector.extract_strided_slice %54 {offsets = [0, 0], sizes = [8, 32], strides = [1, 1]} : vector<8x128xf32> to vector<8x32xf32>
    %56 = vector.extract_strided_slice %54 {offsets = [0, 32], sizes = [8, 32], strides = [1, 1]} : vector<8x128xf32> to vector<8x32xf32>
    %57 = vector.extract_strided_slice %54 {offsets = [0, 64], sizes = [8, 32], strides = [1, 1]} : vector<8x128xf32> to vector<8x32xf32>
    %58 = vector.extract_strided_slice %54 {offsets = [0, 96], sizes = [8, 32], strides = [1, 1]} : vector<8x128xf32> to vector<8x32xf32>
    %59 = arith.mulf %56, %38 : vector<8x32xf32>
    %60 = arith.mulf %55, %57 : vector<8x32xf32>
    %61 = arith.addf %59, %60 : vector<8x32xf32>
    %62 = math.tanh %61 : vector<8x32xf32>
    %63 = arith.mulf %58, %62 : vector<8x32xf32>
    %c1 = arith.constant 1 : index
    %c0_16 = arith.constant 0 : index
    %c0_17 = arith.constant 0 : index
    %64 = vector.load %arg18[%c1, %c0_16, %c0_17] : memref<8x8x32xf32, #tpu.memory_space<vmem>>, vector<1x8x32xf32>
    %65 = vector.shape_cast %64 : vector<1x8x32xf32> to vector<8x32xf32>
    %66 = vector.shape_cast %63 : vector<8x32xf32> to vector<1x8x32xf32>
    tpu.vector_store %arg18[%c1, %c0_16, %c0_17], %66 {strides = array<i32>} : memref<8x8x32xf32, #tpu.memory_space<vmem>>, vector<1x8x32xf32>,
    %67 = vector.extract_strided_slice %17 {offsets = [2, 0, 0], sizes = [1, 8, 128], strides = [1, 1, 1]} : vector<8x8x128xf32> to vector<1x8x128xf32>
    %68 = vector.shape_cast %67 : vector<1x8x128xf32> to vector<8x128xf32>
    %cst_18 = arith.constant dense<0.000000e+00> : vector<8x128xf32>
    %69 = tpu.matmul %63, %18, %cst_18 {dimension_numbers = #tpu.dot_dimension_numbers<[1], [0], [0], [1], [0, 0, 1, 1], [], []>} : vector<8x32xf32>, vector<32x128xf32>, vector<8x128xf32> -> vector<8x128xf32>
    %70 = arith.addf %68, %69 : vector<8x128xf32>
    %71 = math.tanh %70 : vector<8x128xf32>
    %72 = arith.negf %70 : vector<8x128xf32>
    %73 = math.exp %72 : vector<8x128xf32>
    %cst_19 = arith.constant 1.000000e+00 : f32
    %74 = vector.broadcast %cst_19 : f32 to vector<8x128xf32>
    %75 = arith.addf %74, %73 : vector<8x128xf32>
    %76 = arith.divf %74, %75 : vector<8x128xf32>
    %77 = arith.select %5, %71, %76 : vector<8x128xi1>, vector<8x128xf32>
    %78 = vector.extract_strided_slice %77 {offsets = [0, 0], sizes = [8, 32], strides = [1, 1]} : vector<8x128xf32> to vector<8x32xf32>
    %79 = vector.extract_strided_slice %77 {offsets = [0, 32], sizes = [8, 32], strides = [1, 1]} : vector<8x128xf32> to vector<8x32xf32>
    %80 = vector.extract_strided_slice %77 {offsets = [0, 64], sizes = [8, 32], strides = [1, 1]} : vector<8x128xf32> to vector<8x32xf32>
    %81 = vector.extract_strided_slice %77 {offsets = [0, 96], sizes = [8, 32], strides = [1, 1]} : vector<8x128xf32> to vector<8x32xf32>
    %82 = arith.mulf %79, %61 : vector<8x32xf32>
    %83 = arith.mulf %78, %80 : vector<8x32xf32>
    %84 = arith.addf %82, %83 : vector<8x32xf32>
    %85 = math.tanh %84 : vector<8x32xf32>
    %86 = arith.mulf %81, %85 : vector<8x32xf32>
    %c2 = arith.constant 2 : index
    %c0_20 = arith.constant 0 : index
    %c0_21 = arith.constant 0 : index
    %87 = vector.load %arg18[%c2, %c0_20, %c0_21] : memref<8x8x32xf32, #tpu.memory_space<vmem>>, vector<1x8x32xf32>
    %88 = vector.shape_cast %87 : vector<1x8x32xf32> to vector<8x32xf32>
    %89 = vector.shape_cast %86 : vector<8x32xf32> to vector<1x8x32xf32>
    tpu.vector_store %arg18[%c2, %c0_20, %c0_21], %89 {strides = array<i32>} : memref<8x8x32xf32, #tpu.memory_space<vmem>>, vector<1x8x32xf32>,
    %90 = vector.extract_strided_slice %17 {offsets = [3, 0, 0], sizes = [1, 8, 128], strides = [1, 1, 1]} : vector<8x8x128xf32> to vector<1x8x128xf32>
    %91 = vector.shape_cast %90 : vector<1x8x128xf32> to vector<8x128xf32>
    %cst_22 = arith.constant dense<0.000000e+00> : vector<8x128xf32>
    %92 = tpu.matmul %86, %18, %cst_22 {dimension_numbers = #tpu.dot_dimension_numbers<[1], [0], [0], [1], [0, 0, 1, 1], [], []>} : vector<8x32xf32>, vector<32x128xf32>, vector<8x128xf32> -> vector<8x128xf32>
    %93 = arith.addf %91, %92 : vector<8x128xf32>
    %94 = math.tanh %93 : vector<8x128xf32>
    %95 = arith.negf %93 : vector<8x128xf32>
    %96 = math.exp %95 : vector<8x128xf32>
    %cst_23 = arith.constant 1.000000e+00 : f32
    %97 = vector.broadcast %cst_23 : f32 to vector<8x128xf32>
    %98 = arith.addf %97, %96 : vector<8x128xf32>
    %99 = arith.divf %97, %98 : vector<8x128xf32>
    %100 = arith.select %5, %94, %99 : vector<8x128xi1>, vector<8x128xf32>
    %101 = vector.extract_strided_slice %100 {offsets = [0, 0], sizes = [8, 32], strides = [1, 1]} : vector<8x128xf32> to vector<8x32xf32>
    %102 = vector.extract_strided_slice %100 {offsets = [0, 32], sizes = [8, 32], strides = [1, 1]} : vector<8x128xf32> to vector<8x32xf32>
    %103 = vector.extract_strided_slice %100 {offsets = [0, 64], sizes = [8, 32], strides = [1, 1]} : vector<8x128xf32> to vector<8x32xf32>
    %104 = vector.extract_strided_slice %100 {offsets = [0, 96], sizes = [8, 32], strides = [1, 1]} : vector<8x128xf32> to vector<8x32xf32>
    %105 = arith.mulf %102, %84 : vector<8x32xf32>
    %106 = arith.mulf %101, %103 : vector<8x32xf32>
    %107 = arith.addf %105, %106 : vector<8x32xf32>
    %108 = math.tanh %107 : vector<8x32xf32>
    %109 = arith.mulf %104, %108 : vector<8x32xf32>
    %c3 = arith.constant 3 : index
    %c0_24 = arith.constant 0 : index
    %c0_25 = arith.constant 0 : index
    %110 = vector.load %arg18[%c3, %c0_24, %c0_25] : memref<8x8x32xf32, #tpu.memory_space<vmem>>, vector<1x8x32xf32>
    %111 = vector.shape_cast %110 : vector<1x8x32xf32> to vector<8x32xf32>
    %112 = vector.shape_cast %109 : vector<8x32xf32> to vector<1x8x32xf32>
    tpu.vector_store %arg18[%c3, %c0_24, %c0_25], %112 {strides = array<i32>} : memref<8x8x32xf32, #tpu.memory_space<vmem>>, vector<1x8x32xf32>,
    %113 = vector.extract_strided_slice %17 {offsets = [4, 0, 0], sizes = [1, 8, 128], strides = [1, 1, 1]} : vector<8x8x128xf32> to vector<1x8x128xf32>
    %114 = vector.shape_cast %113 : vector<1x8x128xf32> to vector<8x128xf32>
    %cst_26 = arith.constant dense<0.000000e+00> : vector<8x128xf32>
    %115 = tpu.matmul %109, %18, %cst_26 {dimension_numbers = #tpu.dot_dimension_numbers<[1], [0], [0], [1], [0, 0, 1, 1], [], []>} : vector<8x32xf32>, vector<32x128xf32>, vector<8x128xf32> -> vector<8x128xf32>
    %116 = arith.addf %114, %115 : vector<8x128xf32>
    %117 = math.tanh %116 : vector<8x128xf32>
    %118 = arith.negf %116 : vector<8x128xf32>
    %119 = math.exp %118 : vector<8x128xf32>
    %cst_27 = arith.constant 1.000000e+00 : f32
    %120 = vector.broadcast %cst_27 : f32 to vector<8x128xf32>
    %121 = arith.addf %120, %119 : vector<8x128xf32>
    %122 = arith.divf %120, %121 : vector<8x128xf32>
    %123 = arith.select %5, %117, %122 : vector<8x128xi1>, vector<8x128xf32>
    %124 = vector.extract_strided_slice %123 {offsets = [0, 0], sizes = [8, 32], strides = [1, 1]} : vector<8x128xf32> to vector<8x32xf32>
    %125 = vector.extract_strided_slice %123 {offsets = [0, 32], sizes = [8, 32], strides = [1, 1]} : vector<8x128xf32> to vector<8x32xf32>
    %126 = vector.extract_strided_slice %123 {offsets = [0, 64], sizes = [8, 32], strides = [1, 1]} : vector<8x128xf32> to vector<8x32xf32>
    %127 = vector.extract_strided_slice %123 {offsets = [0, 96], sizes = [8, 32], strides = [1, 1]} : vector<8x128xf32> to vector<8x32xf32>
    %128 = arith.mulf %125, %107 : vector<8x32xf32>
    %129 = arith.mulf %124, %126 : vector<8x32xf32>
    %130 = arith.addf %128, %129 : vector<8x32xf32>
    %131 = math.tanh %130 : vector<8x32xf32>
    %132 = arith.mulf %127, %131 : vector<8x32xf32>
    %c4 = arith.constant 4 : index
    %c0_28 = arith.constant 0 : index
    %c0_29 = arith.constant 0 : index
    %133 = vector.load %arg18[%c4, %c0_28, %c0_29] : memref<8x8x32xf32, #tpu.memory_space<vmem>>, vector<1x8x32xf32>
    %134 = vector.shape_cast %133 : vector<1x8x32xf32> to vector<8x32xf32>
    %135 = vector.shape_cast %132 : vector<8x32xf32> to vector<1x8x32xf32>
    tpu.vector_store %arg18[%c4, %c0_28, %c0_29], %135 {strides = array<i32>} : memref<8x8x32xf32, #tpu.memory_space<vmem>>, vector<1x8x32xf32>,
    %136 = vector.extract_strided_slice %17 {offsets = [5, 0, 0], sizes = [1, 8, 128], strides = [1, 1, 1]} : vector<8x8x128xf32> to vector<1x8x128xf32>
    %137 = vector.shape_cast %136 : vector<1x8x128xf32> to vector<8x128xf32>
    %cst_30 = arith.constant dense<0.000000e+00> : vector<8x128xf32>
    %138 = tpu.matmul %132, %18, %cst_30 {dimension_numbers = #tpu.dot_dimension_numbers<[1], [0], [0], [1], [0, 0, 1, 1], [], []>} : vector<8x32xf32>, vector<32x128xf32>, vector<8x128xf32> -> vector<8x128xf32>
    %139 = arith.addf %137, %138 : vector<8x128xf32>
    %140 = math.tanh %139 : vector<8x128xf32>
    %141 = arith.negf %139 : vector<8x128xf32>
    %142 = math.exp %141 : vector<8x128xf32>
    %cst_31 = arith.constant 1.000000e+00 : f32
    %143 = vector.broadcast %cst_31 : f32 to vector<8x128xf32>
    %144 = arith.addf %143, %142 : vector<8x128xf32>
    %145 = arith.divf %143, %144 : vector<8x128xf32>
    %146 = arith.select %5, %140, %145 : vector<8x128xi1>, vector<8x128xf32>
    %147 = vector.extract_strided_slice %146 {offsets = [0, 0], sizes = [8, 32], strides = [1, 1]} : vector<8x128xf32> to vector<8x32xf32>
    %148 = vector.extract_strided_slice %146 {offsets = [0, 32], sizes = [8, 32], strides = [1, 1]} : vector<8x128xf32> to vector<8x32xf32>
    %149 = vector.extract_strided_slice %146 {offsets = [0, 64], sizes = [8, 32], strides = [1, 1]} : vector<8x128xf32> to vector<8x32xf32>
    %150 = vector.extract_strided_slice %146 {offsets = [0, 96], sizes = [8, 32], strides = [1, 1]} : vector<8x128xf32> to vector<8x32xf32>
    %151 = arith.mulf %148, %130 : vector<8x32xf32>
    %152 = arith.mulf %147, %149 : vector<8x32xf32>
    %153 = arith.addf %151, %152 : vector<8x32xf32>
    %154 = math.tanh %153 : vector<8x32xf32>
    %155 = arith.mulf %150, %154 : vector<8x32xf32>
    %c5 = arith.constant 5 : index
    %c0_32 = arith.constant 0 : index
    %c0_33 = arith.constant 0 : index
    %156 = vector.load %arg18[%c5, %c0_32, %c0_33] : memref<8x8x32xf32, #tpu.memory_space<vmem>>, vector<1x8x32xf32>
    %157 = vector.shape_cast %156 : vector<1x8x32xf32> to vector<8x32xf32>
    %158 = vector.shape_cast %155 : vector<8x32xf32> to vector<1x8x32xf32>
    tpu.vector_store %arg18[%c5, %c0_32, %c0_33], %158 {strides = array<i32>} : memref<8x8x32xf32, #tpu.memory_space<vmem>>, vector<1x8x32xf32>,
    %159 = vector.extract_strided_slice %17 {offsets = [6, 0, 0], sizes = [1, 8, 128], strides = [1, 1, 1]} : vector<8x8x128xf32> to vector<1x8x128xf32>
    %160 = vector.shape_cast %159 : vector<1x8x128xf32> to vector<8x128xf32>
    %cst_34 = arith.constant dense<0.000000e+00> : vector<8x128xf32>
    %161 = tpu.matmul %155, %18, %cst_34 {dimension_numbers = #tpu.dot_dimension_numbers<[1], [0], [0], [1], [0, 0, 1, 1], [], []>} : vector<8x32xf32>, vector<32x128xf32>, vector<8x128xf32> -> vector<8x128xf32>
    %162 = arith.addf %160, %161 : vector<8x128xf32>
    %163 = math.tanh %162 : vector<8x128xf32>
    %164 = arith.negf %162 : vector<8x128xf32>
    %165 = math.exp %164 : vector<8x128xf32>
    %cst_35 = arith.constant 1.000000e+00 : f32
    %166 = vector.broadcast %cst_35 : f32 to vector<8x128xf32>
    %167 = arith.addf %166, %165 : vector<8x128xf32>
    %168 = arith.divf %166, %167 : vector<8x128xf32>
    %169 = arith.select %5, %163, %168 : vector<8x128xi1>, vector<8x128xf32>
    %170 = vector.extract_strided_slice %169 {offsets = [0, 0], sizes = [8, 32], strides = [1, 1]} : vector<8x128xf32> to vector<8x32xf32>
    %171 = vector.extract_strided_slice %169 {offsets = [0, 32], sizes = [8, 32], strides = [1, 1]} : vector<8x128xf32> to vector<8x32xf32>
    %172 = vector.extract_strided_slice %169 {offsets = [0, 64], sizes = [8, 32], strides = [1, 1]} : vector<8x128xf32> to vector<8x32xf32>
    %173 = vector.extract_strided_slice %169 {offsets = [0, 96], sizes = [8, 32], strides = [1, 1]} : vector<8x128xf32> to vector<8x32xf32>
    %174 = arith.mulf %171, %153 : vector<8x32xf32>
    %175 = arith.mulf %170, %172 : vector<8x32xf32>
    %176 = arith.addf %174, %175 : vector<8x32xf32>
    %177 = math.tanh %176 : vector<8x32xf32>
    %178 = arith.mulf %173, %177 : vector<8x32xf32>
    %c6 = arith.constant 6 : index
    %c0_36 = arith.constant 0 : index
    %c0_37 = arith.constant 0 : index
    %179 = vector.load %arg18[%c6, %c0_36, %c0_37] : memref<8x8x32xf32, #tpu.memory_space<vmem>>, vector<1x8x32xf32>
    %180 = vector.shape_cast %179 : vector<1x8x32xf32> to vector<8x32xf32>
    %181 = vector.shape_cast %178 : vector<8x32xf32> to vector<1x8x32xf32>
    tpu.vector_store %arg18[%c6, %c0_36, %c0_37], %181 {strides = array<i32>} : memref<8x8x32xf32, #tpu.memory_space<vmem>>, vector<1x8x32xf32>,
    %182 = vector.extract_strided_slice %17 {offsets = [7, 0, 0], sizes = [1, 8, 128], strides = [1, 1, 1]} : vector<8x8x128xf32> to vector<1x8x128xf32>
    %183 = vector.shape_cast %182 : vector<1x8x128xf32> to vector<8x128xf32>
    %cst_38 = arith.constant dense<0.000000e+00> : vector<8x128xf32>
    %184 = tpu.matmul %178, %18, %cst_38 {dimension_numbers = #tpu.dot_dimension_numbers<[1], [0], [0], [1], [0, 0, 1, 1], [], []>} : vector<8x32xf32>, vector<32x128xf32>, vector<8x128xf32> -> vector<8x128xf32>
    %185 = arith.addf %183, %184 : vector<8x128xf32>
    %186 = math.tanh %185 : vector<8x128xf32>
    %187 = arith.negf %185 : vector<8x128xf32>
    %188 = math.exp %187 : vector<8x128xf32>
    %cst_39 = arith.constant 1.000000e+00 : f32
    %189 = vector.broadcast %cst_39 : f32 to vector<8x128xf32>
    %190 = arith.addf %189, %188 : vector<8x128xf32>
    %191 = arith.divf %189, %190 : vector<8x128xf32>
    %192 = arith.select %5, %186, %191 : vector<8x128xi1>, vector<8x128xf32>
    %193 = vector.extract_strided_slice %192 {offsets = [0, 0], sizes = [8, 32], strides = [1, 1]} : vector<8x128xf32> to vector<8x32xf32>
    %194 = vector.extract_strided_slice %192 {offsets = [0, 32], sizes = [8, 32], strides = [1, 1]} : vector<8x128xf32> to vector<8x32xf32>
    %195 = vector.extract_strided_slice %192 {offsets = [0, 64], sizes = [8, 32], strides = [1, 1]} : vector<8x128xf32> to vector<8x32xf32>
    %196 = vector.extract_strided_slice %192 {offsets = [0, 96], sizes = [8, 32], strides = [1, 1]} : vector<8x128xf32> to vector<8x32xf32>
    %197 = arith.mulf %194, %176 : vector<8x32xf32>
    %198 = arith.mulf %193, %195 : vector<8x32xf32>
    %199 = arith.addf %197, %198 : vector<8x32xf32>
    %200 = math.tanh %199 : vector<8x32xf32>
    %201 = arith.mulf %196, %200 : vector<8x32xf32>
    %c7 = arith.constant 7 : index
    %c0_40 = arith.constant 0 : index
    %c0_41 = arith.constant 0 : index
    %202 = vector.load %arg18[%c7, %c0_40, %c0_41] : memref<8x8x32xf32, #tpu.memory_space<vmem>>, vector<1x8x32xf32>
    %203 = vector.shape_cast %202 : vector<1x8x32xf32> to vector<8x32xf32>
    %204 = vector.shape_cast %201 : vector<8x32xf32> to vector<1x8x32xf32>
    tpu.vector_store %arg18[%c7, %c0_40, %c0_41], %204 {strides = array<i32>} : memref<8x8x32xf32, #tpu.memory_space<vmem>>, vector<1x8x32xf32>,
    %c0_42 = arith.constant 0 : index
    %c0_43 = arith.constant 0 : index
    %c0_44 = arith.constant 0 : index
    %205 = vector.load %arg18[%c0_42, %c0_43, %c0_44] : memref<8x8x32xf32, #tpu.memory_space<vmem>>, vector<8x8x32xf32>
    %206 = vector.shape_cast %205 : vector<8x8x32xf32> to vector<64x32xf32>
    %c0_45 = arith.constant 0 : index
    %c0_46 = arith.constant 0 : index
    %207 = vector.load %arg4[%c0_45, %c0_46] : memref<32x128xf32, #tpu.memory_space<vmem>>, vector<32x128xf32>
    %cst_47 = arith.constant dense<0.000000e+00> : vector<64x128xf32>
    %208 = tpu.matmul %206, %207, %cst_47 {dimension_numbers = #tpu.dot_dimension_numbers<[1], [0], [0], [1], [0, 0, 1, 1], [], []>} : vector<64x32xf32>, vector<32x128xf32>, vector<64x128xf32> -> vector<64x128xf32>
    %c0_48 = arith.constant 0 : index
    %c0_49 = arith.constant 0 : index
    %209 = vector.load %arg6[%c0_48, %c0_49] : memref<1x128xf32, #tpu.memory_space<vmem>>, vector<1x128xf32>
    %210 = vector.broadcast %209 : vector<1x128xf32> to vector<64x128xf32>
    %211 = arith.addf %208, %210 : vector<64x128xf32>
    %212 = vector.shape_cast %211 : vector<64x128xf32> to vector<8x8x128xf32>
    %c0_50 = arith.constant 0 : index
    %c0_51 = arith.constant 0 : index
    %213 = vector.load %arg5[%c0_50, %c0_51] : memref<32x128xf32, #tpu.memory_space<vmem>>, vector<32x128xf32>
    %cst_52 = arith.constant 0.000000e+00 : f32
    %214 = vector.broadcast %cst_52 : f32 to vector<8x32xf32>
    %cst_53 = arith.constant 0.000000e+00 : f32
    %215 = vector.broadcast %cst_53 : f32 to vector<8x32xf32>
    %216 = vector.extract_strided_slice %212 {offsets = [0, 0, 0], sizes = [1, 8, 128], strides = [1, 1, 1]} : vector<8x8x128xf32> to vector<1x8x128xf32>
    %217 = vector.shape_cast %216 : vector<1x8x128xf32> to vector<8x128xf32>
    %cst_54 = arith.constant dense<0.000000e+00> : vector<8x128xf32>
    %218 = tpu.matmul %214, %213, %cst_54 {dimension_numbers = #tpu.dot_dimension_numbers<[1], [0], [0], [1], [0, 0, 1, 1], [], []>} : vector<8x32xf32>, vector<32x128xf32>, vector<8x128xf32> -> vector<8x128xf32>
    %219 = arith.addf %217, %218 : vector<8x128xf32>
    %220 = math.tanh %219 : vector<8x128xf32>
    %221 = arith.negf %219 : vector<8x128xf32>
    %222 = math.exp %221 : vector<8x128xf32>
    %cst_55 = arith.constant 1.000000e+00 : f32
    %223 = vector.broadcast %cst_55 : f32 to vector<8x128xf32>
    %224 = arith.addf %223, %222 : vector<8x128xf32>
    %225 = arith.divf %223, %224 : vector<8x128xf32>
    %226 = arith.select %5, %220, %225 : vector<8x128xi1>, vector<8x128xf32>
    %227 = vector.extract_strided_slice %226 {offsets = [0, 0], sizes = [8, 32], strides = [1, 1]} : vector<8x128xf32> to vector<8x32xf32>
    %228 = vector.extract_strided_slice %226 {offsets = [0, 32], sizes = [8, 32], strides = [1, 1]} : vector<8x128xf32> to vector<8x32xf32>
    %229 = vector.extract_strided_slice %226 {offsets = [0, 64], sizes = [8, 32], strides = [1, 1]} : vector<8x128xf32> to vector<8x32xf32>
    %230 = vector.extract_strided_slice %226 {offsets = [0, 96], sizes = [8, 32], strides = [1, 1]} : vector<8x128xf32> to vector<8x32xf32>
    %231 = arith.mulf %228, %215 : vector<8x32xf32>
    %232 = arith.mulf %227, %229 : vector<8x32xf32>
    %233 = arith.addf %231, %232 : vector<8x32xf32>
    %234 = math.tanh %233 : vector<8x32xf32>
    %235 = arith.mulf %230, %234 : vector<8x32xf32>
    %236 = vector.extract_strided_slice %212 {offsets = [1, 0, 0], sizes = [1, 8, 128], strides = [1, 1, 1]} : vector<8x8x128xf32> to vector<1x8x128xf32>
    %237 = vector.shape_cast %236 : vector<1x8x128xf32> to vector<8x128xf32>
    %cst_56 = arith.constant dense<0.000000e+00> : vector<8x128xf32>
    %238 = tpu.matmul %235, %213, %cst_56 {dimension_numbers = #tpu.dot_dimension_numbers<[1], [0], [0], [1], [0, 0, 1, 1], [], []>} : vector<8x32xf32>, vector<32x128xf32>, vector<8x128xf32> -> vector<8x128xf32>
    %239 = arith.addf %237, %238 : vector<8x128xf32>
    %240 = math.tanh %239 : vector<8x128xf32>
    %241 = arith.negf %239 : vector<8x128xf32>
    %242 = math.exp %241 : vector<8x128xf32>
    %cst_57 = arith.constant 1.000000e+00 : f32
    %243 = vector.broadcast %cst_57 : f32 to vector<8x128xf32>
    %244 = arith.addf %243, %242 : vector<8x128xf32>
    %245 = arith.divf %243, %244 : vector<8x128xf32>
    %246 = arith.select %5, %240, %245 : vector<8x128xi1>, vector<8x128xf32>
    %247 = vector.extract_strided_slice %246 {offsets = [0, 0], sizes = [8, 32], strides = [1, 1]} : vector<8x128xf32> to vector<8x32xf32>
    %248 = vector.extract_strided_slice %246 {offsets = [0, 32], sizes = [8, 32], strides = [1, 1]} : vector<8x128xf32> to vector<8x32xf32>
    %249 = vector.extract_strided_slice %246 {offsets = [0, 64], sizes = [8, 32], strides = [1, 1]} : vector<8x128xf32> to vector<8x32xf32>
    %250 = vector.extract_strided_slice %246 {offsets = [0, 96], sizes = [8, 32], strides = [1, 1]} : vector<8x128xf32> to vector<8x32xf32>
    %251 = arith.mulf %248, %233 : vector<8x32xf32>
    %252 = arith.mulf %247, %249 : vector<8x32xf32>
    %253 = arith.addf %251, %252 : vector<8x32xf32>
    %254 = math.tanh %253 : vector<8x32xf32>
    %255 = arith.mulf %250, %254 : vector<8x32xf32>
    %256 = vector.extract_strided_slice %212 {offsets = [2, 0, 0], sizes = [1, 8, 128], strides = [1, 1, 1]} : vector<8x8x128xf32> to vector<1x8x128xf32>
    %257 = vector.shape_cast %256 : vector<1x8x128xf32> to vector<8x128xf32>
    %cst_58 = arith.constant dense<0.000000e+00> : vector<8x128xf32>
    %258 = tpu.matmul %255, %213, %cst_58 {dimension_numbers = #tpu.dot_dimension_numbers<[1], [0], [0], [1], [0, 0, 1, 1], [], []>} : vector<8x32xf32>, vector<32x128xf32>, vector<8x128xf32> -> vector<8x128xf32>
    %259 = arith.addf %257, %258 : vector<8x128xf32>
    %260 = math.tanh %259 : vector<8x128xf32>
    %261 = arith.negf %259 : vector<8x128xf32>
    %262 = math.exp %261 : vector<8x128xf32>
    %cst_59 = arith.constant 1.000000e+00 : f32
    %263 = vector.broadcast %cst_59 : f32 to vector<8x128xf32>
    %264 = arith.addf %263, %262 : vector<8x128xf32>
    %265 = arith.divf %263, %264 : vector<8x128xf32>
    %266 = arith.select %5, %260, %265 : vector<8x128xi1>, vector<8x128xf32>
    %267 = vector.extract_strided_slice %266 {offsets = [0, 0], sizes = [8, 32], strides = [1, 1]} : vector<8x128xf32> to vector<8x32xf32>
    %268 = vector.extract_strided_slice %266 {offsets = [0, 32], sizes = [8, 32], strides = [1, 1]} : vector<8x128xf32> to vector<8x32xf32>
    %269 = vector.extract_strided_slice %266 {offsets = [0, 64], sizes = [8, 32], strides = [1, 1]} : vector<8x128xf32> to vector<8x32xf32>
    %270 = vector.extract_strided_slice %266 {offsets = [0, 96], sizes = [8, 32], strides = [1, 1]} : vector<8x128xf32> to vector<8x32xf32>
    %271 = arith.mulf %268, %253 : vector<8x32xf32>
    %272 = arith.mulf %267, %269 : vector<8x32xf32>
    %273 = arith.addf %271, %272 : vector<8x32xf32>
    %274 = math.tanh %273 : vector<8x32xf32>
    %275 = arith.mulf %270, %274 : vector<8x32xf32>
    %276 = vector.extract_strided_slice %212 {offsets = [3, 0, 0], sizes = [1, 8, 128], strides = [1, 1, 1]} : vector<8x8x128xf32> to vector<1x8x128xf32>
    %277 = vector.shape_cast %276 : vector<1x8x128xf32> to vector<8x128xf32>
    %cst_60 = arith.constant dense<0.000000e+00> : vector<8x128xf32>
    %278 = tpu.matmul %275, %213, %cst_60 {dimension_numbers = #tpu.dot_dimension_numbers<[1], [0], [0], [1], [0, 0, 1, 1], [], []>} : vector<8x32xf32>, vector<32x128xf32>, vector<8x128xf32> -> vector<8x128xf32>
    %279 = arith.addf %277, %278 : vector<8x128xf32>
    %280 = math.tanh %279 : vector<8x128xf32>
    %281 = arith.negf %279 : vector<8x128xf32>
    %282 = math.exp %281 : vector<8x128xf32>
    %cst_61 = arith.constant 1.000000e+00 : f32
    %283 = vector.broadcast %cst_61 : f32 to vector<8x128xf32>
    %284 = arith.addf %283, %282 : vector<8x128xf32>
    %285 = arith.divf %283, %284 : vector<8x128xf32>
    %286 = arith.select %5, %280, %285 : vector<8x128xi1>, vector<8x128xf32>
    %287 = vector.extract_strided_slice %286 {offsets = [0, 0], sizes = [8, 32], strides = [1, 1]} : vector<8x128xf32> to vector<8x32xf32>
    %288 = vector.extract_strided_slice %286 {offsets = [0, 32], sizes = [8, 32], strides = [1, 1]} : vector<8x128xf32> to vector<8x32xf32>
    %289 = vector.extract_strided_slice %286 {offsets = [0, 64], sizes = [8, 32], strides = [1, 1]} : vector<8x128xf32> to vector<8x32xf32>
    %290 = vector.extract_strided_slice %286 {offsets = [0, 96], sizes = [8, 32], strides = [1, 1]} : vector<8x128xf32> to vector<8x32xf32>
    %291 = arith.mulf %288, %273 : vector<8x32xf32>
    %292 = arith.mulf %287, %289 : vector<8x32xf32>
    %293 = arith.addf %291, %292 : vector<8x32xf32>
    %294 = math.tanh %293 : vector<8x32xf32>
    %295 = arith.mulf %290, %294 : vector<8x32xf32>
    %296 = vector.extract_strided_slice %212 {offsets = [4, 0, 0], sizes = [1, 8, 128], strides = [1, 1, 1]} : vector<8x8x128xf32> to vector<1x8x128xf32>
    %297 = vector.shape_cast %296 : vector<1x8x128xf32> to vector<8x128xf32>
    %cst_62 = arith.constant dense<0.000000e+00> : vector<8x128xf32>
    %298 = tpu.matmul %295, %213, %cst_62 {dimension_numbers = #tpu.dot_dimension_numbers<[1], [0], [0], [1], [0, 0, 1, 1], [], []>} : vector<8x32xf32>, vector<32x128xf32>, vector<8x128xf32> -> vector<8x128xf32>
    %299 = arith.addf %297, %298 : vector<8x128xf32>
    %300 = math.tanh %299 : vector<8x128xf32>
    %301 = arith.negf %299 : vector<8x128xf32>
    %302 = math.exp %301 : vector<8x128xf32>
    %cst_63 = arith.constant 1.000000e+00 : f32
    %303 = vector.broadcast %cst_63 : f32 to vector<8x128xf32>
    %304 = arith.addf %303, %302 : vector<8x128xf32>
    %305 = arith.divf %303, %304 : vector<8x128xf32>
    %306 = arith.select %5, %300, %305 : vector<8x128xi1>, vector<8x128xf32>
    %307 = vector.extract_strided_slice %306 {offsets = [0, 0], sizes = [8, 32], strides = [1, 1]} : vector<8x128xf32> to vector<8x32xf32>
    %308 = vector.extract_strided_slice %306 {offsets = [0, 32], sizes = [8, 32], strides = [1, 1]} : vector<8x128xf32> to vector<8x32xf32>
    %309 = vector.extract_strided_slice %306 {offsets = [0, 64], sizes = [8, 32], strides = [1, 1]} : vector<8x128xf32> to vector<8x32xf32>
    %310 = vector.extract_strided_slice %306 {offsets = [0, 96], sizes = [8, 32], strides = [1, 1]} : vector<8x128xf32> to vector<8x32xf32>
    %311 = arith.mulf %308, %293 : vector<8x32xf32>
    %312 = arith.mulf %307, %309 : vector<8x32xf32>
    %313 = arith.addf %311, %312 : vector<8x32xf32>
    %314 = math.tanh %313 : vector<8x32xf32>
    %315 = arith.mulf %310, %314 : vector<8x32xf32>
    %316 = vector.extract_strided_slice %212 {offsets = [5, 0, 0], sizes = [1, 8, 128], strides = [1, 1, 1]} : vector<8x8x128xf32> to vector<1x8x128xf32>
    %317 = vector.shape_cast %316 : vector<1x8x128xf32> to vector<8x128xf32>
    %cst_64 = arith.constant dense<0.000000e+00> : vector<8x128xf32>
    %318 = tpu.matmul %315, %213, %cst_64 {dimension_numbers = #tpu.dot_dimension_numbers<[1], [0], [0], [1], [0, 0, 1, 1], [], []>} : vector<8x32xf32>, vector<32x128xf32>, vector<8x128xf32> -> vector<8x128xf32>
    %319 = arith.addf %317, %318 : vector<8x128xf32>
    %320 = math.tanh %319 : vector<8x128xf32>
    %321 = arith.negf %319 : vector<8x128xf32>
    %322 = math.exp %321 : vector<8x128xf32>
    %cst_65 = arith.constant 1.000000e+00 : f32
    %323 = vector.broadcast %cst_65 : f32 to vector<8x128xf32>
    %324 = arith.addf %323, %322 : vector<8x128xf32>
    %325 = arith.divf %323, %324 : vector<8x128xf32>
    %326 = arith.select %5, %320, %325 : vector<8x128xi1>, vector<8x128xf32>
    %327 = vector.extract_strided_slice %326 {offsets = [0, 0], sizes = [8, 32], strides = [1, 1]} : vector<8x128xf32> to vector<8x32xf32>
    %328 = vector.extract_strided_slice %326 {offsets = [0, 32], sizes = [8, 32], strides = [1, 1]} : vector<8x128xf32> to vector<8x32xf32>
    %329 = vector.extract_strided_slice %326 {offsets = [0, 64], sizes = [8, 32], strides = [1, 1]} : vector<8x128xf32> to vector<8x32xf32>
    %330 = vector.extract_strided_slice %326 {offsets = [0, 96], sizes = [8, 32], strides = [1, 1]} : vector<8x128xf32> to vector<8x32xf32>
    %331 = arith.mulf %328, %313 : vector<8x32xf32>
    %332 = arith.mulf %327, %329 : vector<8x32xf32>
    %333 = arith.addf %331, %332 : vector<8x32xf32>
    %334 = math.tanh %333 : vector<8x32xf32>
    %335 = arith.mulf %330, %334 : vector<8x32xf32>
    %336 = vector.extract_strided_slice %212 {offsets = [6, 0, 0], sizes = [1, 8, 128], strides = [1, 1, 1]} : vector<8x8x128xf32> to vector<1x8x128xf32>
    %337 = vector.shape_cast %336 : vector<1x8x128xf32> to vector<8x128xf32>
    %cst_66 = arith.constant dense<0.000000e+00> : vector<8x128xf32>
    %338 = tpu.matmul %335, %213, %cst_66 {dimension_numbers = #tpu.dot_dimension_numbers<[1], [0], [0], [1], [0, 0, 1, 1], [], []>} : vector<8x32xf32>, vector<32x128xf32>, vector<8x128xf32> -> vector<8x128xf32>
    %339 = arith.addf %337, %338 : vector<8x128xf32>
    %340 = math.tanh %339 : vector<8x128xf32>
    %341 = arith.negf %339 : vector<8x128xf32>
    %342 = math.exp %341 : vector<8x128xf32>
    %cst_67 = arith.constant 1.000000e+00 : f32
    %343 = vector.broadcast %cst_67 : f32 to vector<8x128xf32>
    %344 = arith.addf %343, %342 : vector<8x128xf32>
    %345 = arith.divf %343, %344 : vector<8x128xf32>
    %346 = arith.select %5, %340, %345 : vector<8x128xi1>, vector<8x128xf32>
    %347 = vector.extract_strided_slice %346 {offsets = [0, 0], sizes = [8, 32], strides = [1, 1]} : vector<8x128xf32> to vector<8x32xf32>
    %348 = vector.extract_strided_slice %346 {offsets = [0, 32], sizes = [8, 32], strides = [1, 1]} : vector<8x128xf32> to vector<8x32xf32>
    %349 = vector.extract_strided_slice %346 {offsets = [0, 64], sizes = [8, 32], strides = [1, 1]} : vector<8x128xf32> to vector<8x32xf32>
    %350 = vector.extract_strided_slice %346 {offsets = [0, 96], sizes = [8, 32], strides = [1, 1]} : vector<8x128xf32> to vector<8x32xf32>
    %351 = arith.mulf %348, %333 : vector<8x32xf32>
    %352 = arith.mulf %347, %349 : vector<8x32xf32>
    %353 = arith.addf %351, %352 : vector<8x32xf32>
    %354 = math.tanh %353 : vector<8x32xf32>
    %355 = arith.mulf %350, %354 : vector<8x32xf32>
    %356 = vector.extract_strided_slice %212 {offsets = [7, 0, 0], sizes = [1, 8, 128], strides = [1, 1, 1]} : vector<8x8x128xf32> to vector<1x8x128xf32>
    %357 = vector.shape_cast %356 : vector<1x8x128xf32> to vector<8x128xf32>
    %cst_68 = arith.constant dense<0.000000e+00> : vector<8x128xf32>
    %358 = tpu.matmul %355, %213, %cst_68 {dimension_numbers = #tpu.dot_dimension_numbers<[1], [0], [0], [1], [0, 0, 1, 1], [], []>} : vector<8x32xf32>, vector<32x128xf32>, vector<8x128xf32> -> vector<8x128xf32>
    %359 = arith.addf %357, %358 : vector<8x128xf32>
    %360 = math.tanh %359 : vector<8x128xf32>
    %361 = arith.negf %359 : vector<8x128xf32>
    %362 = math.exp %361 : vector<8x128xf32>
    %cst_69 = arith.constant 1.000000e+00 : f32
    %363 = vector.broadcast %cst_69 : f32 to vector<8x128xf32>
    %364 = arith.addf %363, %362 : vector<8x128xf32>
    %365 = arith.divf %363, %364 : vector<8x128xf32>
    %366 = arith.select %5, %360, %365 : vector<8x128xi1>, vector<8x128xf32>
    %367 = vector.extract_strided_slice %366 {offsets = [0, 0], sizes = [8, 32], strides = [1, 1]} : vector<8x128xf32> to vector<8x32xf32>
    %368 = vector.extract_strided_slice %366 {offsets = [0, 32], sizes = [8, 32], strides = [1, 1]} : vector<8x128xf32> to vector<8x32xf32>
    %369 = vector.extract_strided_slice %366 {offsets = [0, 64], sizes = [8, 32], strides = [1, 1]} : vector<8x128xf32> to vector<8x32xf32>
    %370 = vector.extract_strided_slice %366 {offsets = [0, 96], sizes = [8, 32], strides = [1, 1]} : vector<8x128xf32> to vector<8x32xf32>
    %371 = arith.mulf %368, %353 : vector<8x32xf32>
    %372 = arith.mulf %367, %369 : vector<8x32xf32>
    %373 = arith.addf %371, %372 : vector<8x32xf32>
    %374 = math.tanh %373 : vector<8x32xf32>
    %375 = arith.mulf %370, %374 : vector<8x32xf32>
    %c0_70 = arith.constant 0 : index
    %c0_71 = arith.constant 0 : index
    %376 = vector.load %arg7[%c0_70, %c0_71] : memref<32x32xf32, #tpu.memory_space<vmem>>, vector<32x32xf32>
    %cst_72 = arith.constant dense<0.000000e+00> : vector<8x32xf32>
    %377 = tpu.matmul %375, %376, %cst_72 {dimension_numbers = #tpu.dot_dimension_numbers<[1], [0], [0], [1], [0, 0, 1, 1], [], []>} : vector<8x32xf32>, vector<32x32xf32>, vector<8x32xf32> -> vector<8x32xf32>
    %c0_73 = arith.constant 0 : index
    %c0_74 = arith.constant 0 : index
    %378 = vector.load %arg8[%c0_73, %c0_74] : memref<1x32xf32, #tpu.memory_space<vmem>>, vector<1x32xf32>
    %379 = vector.broadcast %378 : vector<1x32xf32> to vector<8x32xf32>
    %380 = arith.addf %377, %379 : vector<8x32xf32>
    %381 = vector.broadcast %10 : vector<8x1xf32> to vector<8x32xf32>
    %382 = arith.mulf %380, %381 : vector<8x32xf32>
    %cst_75 = arith.constant dense<0.000000e+00> : vector<32xf32>
    %383 = vector.multi_reduction <add>, %382, %cst_75 [0] : vector<8x32xf32> to vector<32xf32>
    %384 = vector.shape_cast %383 : vector<32xf32> to vector<1x32xf32>
    %cst_76 = arith.constant 2.500000e-01 : f32
    %385 = vector.broadcast %cst_76 : f32 to vector<1x32xf32>
    %386 = arith.mulf %384, %385 : vector<1x32xf32>
    %387 = vector.broadcast %386 : vector<1x32xf32> to vector<8x32xf32>
    %388 = arith.subf %380, %387 : vector<8x32xf32>
    %389 = vector.broadcast %10 : vector<8x1xf32> to vector<8x32xf32>
    %390 = arith.mulf %388, %389 : vector<8x32xf32>
    %391 = arith.mulf %390, %390 : vector<8x32xf32>
    %cst_77 = arith.constant dense<0.000000e+00> : vector<32xf32>
    %392 = vector.multi_reduction <add>, %391, %cst_77 [0] : vector<8x32xf32> to vector<32xf32>
    %393 = vector.shape_cast %392 : vector<32xf32> to vector<1x32xf32>
    %cst_78 = arith.constant 2.500000e-01 : f32
    %394 = vector.broadcast %cst_78 : f32 to vector<1x32xf32>
    %395 = arith.mulf %393, %394 : vector<1x32xf32>
    %396 = vector.broadcast %386 : vector<1x32xf32> to vector<8x32xf32>
    %397 = arith.subf %380, %396 : vector<8x32xf32>
    %cst_79 = arith.constant 9.99999974E-6 : f32
    %398 = vector.broadcast %cst_79 : f32 to vector<1x32xf32>
    %399 = arith.addf %395, %398 : vector<1x32xf32>
    %400 = math.rsqrt %399 : vector<1x32xf32>
    %401 = vector.broadcast %400 : vector<1x32xf32> to vector<8x32xf32>
    %402 = arith.mulf %397, %401 : vector<8x32xf32>
    %c0_80 = arith.constant 0 : index
    %c0_81 = arith.constant 0 : index
    %403 = vector.load %arg9[%c0_80, %c0_81] : memref<1x32xf32, #tpu.memory_space<vmem>>, vector<1x32xf32>
    %404 = vector.broadcast %403 : vector<1x32xf32> to vector<8x32xf32>
    %405 = arith.mulf %402, %404 : vector<8x32xf32>
    %c0_82 = arith.constant 0 : index
    %c0_83 = arith.constant 0 : index
    %406 = vector.load %arg10[%c0_82, %c0_83] : memref<1x32xf32, #tpu.memory_space<vmem>>, vector<1x32xf32>
    %407 = vector.broadcast %406 : vector<1x32xf32> to vector<8x32xf32>
    %408 = arith.addf %405, %407 : vector<8x32xf32>
    %cst_84 = arith.constant 0.000000e+00 : f32
    %409 = vector.broadcast %cst_84 : f32 to vector<8x32xf32>
    %410 = arith.maximumf %408, %409 : vector<8x32xf32>
    %c0_85 = arith.constant 0 : index
    %c0_86 = arith.constant 0 : index
    %411 = vector.load %arg11[%c0_85, %c0_86] : memref<32x16xf32, #tpu.memory_space<vmem>>, vector<32x16xf32>
    %cst_87 = arith.constant dense<0.000000e+00> : vector<8x16xf32>
    %412 = tpu.matmul %410, %411, %cst_87 {dimension_numbers = #tpu.dot_dimension_numbers<[1], [0], [0], [1], [0, 0, 1, 1], [], []>} : vector<8x32xf32>, vector<32x16xf32>, vector<8x16xf32> -> vector<8x16xf32>
    %c0_88 = arith.constant 0 : index
    %c0_89 = arith.constant 0 : index
    %413 = vector.load %arg12[%c0_88, %c0_89] : memref<1x16xf32, #tpu.memory_space<vmem>>, vector<1x16xf32>
    %414 = vector.broadcast %413 : vector<1x16xf32> to vector<8x16xf32>
    %415 = arith.addf %412, %414 : vector<8x16xf32>
    %416 = vector.broadcast %10 : vector<8x1xf32> to vector<8x16xf32>
    %417 = arith.mulf %415, %416 : vector<8x16xf32>
    %cst_90 = arith.constant dense<0.000000e+00> : vector<16xf32>
    %418 = vector.multi_reduction <add>, %417, %cst_90 [0] : vector<8x16xf32> to vector<16xf32>
    %419 = vector.shape_cast %418 : vector<16xf32> to vector<1x16xf32>
    %cst_91 = arith.constant 2.500000e-01 : f32
    %420 = vector.broadcast %cst_91 : f32 to vector<1x16xf32>
    %421 = arith.mulf %419, %420 : vector<1x16xf32>
    %422 = vector.broadcast %421 : vector<1x16xf32> to vector<8x16xf32>
    %423 = arith.subf %415, %422 : vector<8x16xf32>
    %424 = vector.broadcast %10 : vector<8x1xf32> to vector<8x16xf32>
    %425 = arith.mulf %423, %424 : vector<8x16xf32>
    %426 = arith.mulf %425, %425 : vector<8x16xf32>
    %cst_92 = arith.constant dense<0.000000e+00> : vector<16xf32>
    %427 = vector.multi_reduction <add>, %426, %cst_92 [0] : vector<8x16xf32> to vector<16xf32>
    %428 = vector.shape_cast %427 : vector<16xf32> to vector<1x16xf32>
    %cst_93 = arith.constant 2.500000e-01 : f32
    %429 = vector.broadcast %cst_93 : f32 to vector<1x16xf32>
    %430 = arith.mulf %428, %429 : vector<1x16xf32>
    %431 = vector.broadcast %421 : vector<1x16xf32> to vector<8x16xf32>
    %432 = arith.subf %415, %431 : vector<8x16xf32>
    %cst_94 = arith.constant 9.99999974E-6 : f32
    %433 = vector.broadcast %cst_94 : f32 to vector<1x16xf32>
    %434 = arith.addf %430, %433 : vector<1x16xf32>
    %435 = math.rsqrt %434 : vector<1x16xf32>
    %436 = vector.broadcast %435 : vector<1x16xf32> to vector<8x16xf32>
    %437 = arith.mulf %432, %436 : vector<8x16xf32>
    %c0_95 = arith.constant 0 : index
    %c0_96 = arith.constant 0 : index
    %438 = vector.load %arg13[%c0_95, %c0_96] : memref<1x16xf32, #tpu.memory_space<vmem>>, vector<1x16xf32>
    %439 = vector.broadcast %438 : vector<1x16xf32> to vector<8x16xf32>
    %440 = arith.mulf %437, %439 : vector<8x16xf32>
    %c0_97 = arith.constant 0 : index
    %c0_98 = arith.constant 0 : index
    %441 = vector.load %arg14[%c0_97, %c0_98] : memref<1x16xf32, #tpu.memory_space<vmem>>, vector<1x16xf32>
    %442 = vector.broadcast %441 : vector<1x16xf32> to vector<8x16xf32>
    %443 = arith.addf %440, %442 : vector<8x16xf32>
    %cst_99 = arith.constant 0.000000e+00 : f32
    %444 = vector.broadcast %cst_99 : f32 to vector<8x16xf32>
    %445 = arith.maximumf %443, %444 : vector<8x16xf32>
    %c0_100 = arith.constant 0 : index
    %c0_101 = arith.constant 0 : index
    %446 = vector.load %arg15[%c0_100, %c0_101] : memref<16x1xf32, #tpu.memory_space<vmem>>, vector<16x1xf32>
    %cst_102 = arith.constant dense<0.000000e+00> : vector<8x1xf32>
    %447 = tpu.matmul %445, %446, %cst_102 {dimension_numbers = #tpu.dot_dimension_numbers<[1], [0], [0], [1], [0, 0, 1, 1], [], []>} : vector<8x16xf32>, vector<16x1xf32>, vector<8x1xf32> -> vector<8x1xf32>
    %c0_103 = arith.constant 0 : index
    %c0_104 = arith.constant 0 : index
    %448 = vector.load %arg16[%c0_103, %c0_104] : memref<1x1xf32, #tpu.memory_space<vmem>>, vector<1x1xf32>
    %449 = vector.broadcast %448 : vector<1x1xf32> to vector<8x1xf32>
    %450 = arith.addf %447, %449 : vector<8x1xf32>
    %c0_105 = arith.constant 0 : index
    %c0_106 = arith.constant 0 : index
    %451 = vector.load %arg17[%c0_105, %c0_106] : memref<8x1xf32, #tpu.memory_space<vmem>>, vector<8x1xf32>
    tpu.vector_store %arg17[%c0_105, %c0_106], %450 {strides = array<i32>} : memref<8x1xf32, #tpu.memory_space<vmem>>, vector<8x1xf32>,
    return
  }
}

</mosaic_0001>

<bundles_post_ra>
// kernel: lstm_model_forward.1
= control target key start
LH: loop header
LB: loop body
LE: loop exit
PB: predicated region body
PF: predicated region fallthrough
CT: control target
= control target key end

     0   :  { %vm82_vm0 = vcmask 130048   ;;  %v1661_v7 = vmov 0.0   ;;  %v58_v16 = vlaneseq  ;;  %s1662_s27 = smov 64   ;;  %s1663_s28 = smov 32   ;;  %vm152_vm8 = vcmask 261120   ;;  %s2153_s2 = inlined_call_operand.vmem [shape: f32[32,128], index: 2, kind: input, shape index: {}]   ;;  %s2154_s1 = inlined_call_operand.vmem [shape: f32[16,128], index: 1, kind: input, shape index: {}]   ;;  %s2155_s0 = inlined_call_operand.vmem [shape: f32[64,16], index: 0, kind: input, shape index: {}]   ;;  %s2156_s3 = inlined_call_operand.vmem [shape: f32[1,128], index: 3, kind: input, shape index: {}]   ;;  %s2157_s4 = inlined_call_operand.vmem [shape: f32[32,128], index: 4, kind: input, shape index: {}]   ;;  %s2158_s6 = inlined_call_operand.vmem [shape: f32[1,128], index: 6, kind: input, shape index: {}]   ;;  %s2159_s5 = inlined_call_operand.vmem [shape: f32[32,128], index: 5, kind: input, shape index: {}]   ;;  %s2160_s7 = inlined_call_operand.vmem [shape: f32[32,32], index: 7, kind: input, shape index: {}]   ;;  %s2161_s8 = inlined_call_operand.vmem [shape: f32[1,32], index: 8, kind: input, shape index: {}]   ;;  %s2162_s9 = inlined_call_operand.vmem [shape: f32[1,32], index: 9, kind: input, shape index: {}]   ;;  %s2163_s10 = inlined_call_operand.vmem [shape: f32[1,32], index: 10, kind: input, shape index: {}]   ;;  %s2164_s12 = inlined_call_operand.vmem [shape: f32[1,16], index: 12, kind: input, shape index: {}]   ;;  %s2165_s13 = inlined_call_operand.vmem [shape: f32[1,16], index: 13, kind: input, shape index: {}]   ;;  %s2166_s11 = inlined_call_operand.vmem [shape: f32[32,16], index: 11, kind: input, shape index: {}]   ;;  %s2167_s14 = inlined_call_operand.vmem [shape: f32[1,16], index: 14, kind: input, shape index: {}]   ;;  %s2168_s15 = inlined_call_operand.vmem [shape: f32[16,1], index: 15, kind: input, shape index: {}]   ;;  %s2169_s16 = inlined_call_operand.<no memory space> [shape: f32[1,1], index: 16, kind: input, shape index: {}]   ;;  %s2170_s17 = inlined_call_operand.vmem [shape: f32[8,1], index: 17, kind: output, shape index: {}]  }
   0x1   :  { %2173 = sst [smem:[#allocation4_spill]] %s2153_s2  ;;  %v68_v4 = vld [vmem:[%s2155_s0] sm:$0xff]  ;;  %v69_v39 = vld [vmem:[%s2155_s0 + $0x8] sm:$0xff]  ;;  %v1283_v24 = vld [vmem:[%s2160_s7 + $0x10] sm:$0xff] }
   0x2   :  { %2174 = sst [smem:[#allocation5_spill]] %s2154_s1  ;;  %v1812_v8 = vld [vmem:[%s2156_s3] ss:$0 sm:$0xff]  ;;  %v59_v18 = vand.u32 127, %v58_v16 }
   0x3   :  { %s2175_s26 = sld [smem:[#allocation4_spill]] }
   0x4   :  { %s2176_s29 = sld [smem:[#allocation5_spill]]  ;;  %vm60_vm1 = vcmp.ge.s32.totalorder %v59_v18, 64  ;;  %vm61_vm2 = vcmp.lt.s32.totalorder %v59_v18, 96 }
   0x5   :  { %vm1816_vm4 = vmand %vm60_vm1, %vm61_vm2 }
   0x9   :  { %v1757_v0 = vld [vmem:[%s2175_s26 + $0x18] sm:$0xff]  ;;  %v1765_v2 = vld [vmem:[%s2175_s26 + $0x10] sm:$0xff]  ;;  %v1777_v5 = vld [vmem:[%s2175_s26 + $0x8] sm:$0xff] }
   0xa   :  { %v77_v1 = vld [vmem:[%s2176_s29 + $0x8] sm:$0xff]  ;;  %168 = vmatpush.msra.mxu1 %v1757_v0  ;;  %v76_v3 = vld [vmem:[%s2176_s29] sm:$0xff]  ;;  %234 = vmatpush.msra.mxu2 %v1757_v0 }
   0xb   :  { %121 = vmatpush.msra.mxu0 %v77_v1  ;;  %502 = vmatpush.msra.mxu3 %v1757_v0  ;;  %v1786_v6 = vld [vmem:[%s2175_s26] sm:$0xff] }
   0xc   :  { %169 = vmatpush.msra.mxu1 %v1765_v2  ;;  %235 = vmatpush.msra.mxu2 %v1765_v2 }
   0xd   :  { %122 = vmatpush.msra.mxu0 %v76_v3  ;;  %503 = vmatpush.msra.mxu3 %v1765_v2 }
   0xe   :  { %1467 = vmatmul.msk.f32.vlgmr.msra.gmra.mxu0 %vm82_vm0, %v68_v4  ;;  %170 = vmatpush.msra.mxu1 %v1777_v5  ;;  %v70_v4 = vld [vmem:[%s2155_s0 + $0x10] sm:$0xff] }
   0xf   :  { %236 = vmatpush.msra.mxu2 %v1777_v5  ;;  %504 = vmatpush.msra.mxu3 %v1777_v5 }
  0x10   :  { %171 = vmatpush.msra.mxu1 %v1786_v6 }
  0x11   :  { %172 = vmatmul.f32.vlgmr.msra.gmra.mxu1 %v1661_v7  ;;  %237 = vmatpush.msra.mxu2 %v1786_v6 }
  0x12   :  { %301 = vmatpush.msrb.mxu1 %v1757_v0  ;;  %505 = vmatpush.msra.mxu3 %v1786_v6 }
  0x13   :  { %435 = vmatpush.msrb.mxu2 %v1757_v0 }
  0x14   :  { %302 = vmatpush.msrb.mxu1 %v1765_v2 }
  0x15   :  { %436 = vmatpush.msrb.mxu2 %v1765_v2 }
  0x16   :  { %303 = vmatpush.msrb.mxu1 %v1777_v5  ;;  %1468 = vmatmul.msk.f32.gmra.mxu0 %vm82_vm0, %v69_v39 }
  0x17   :  { %437 = vmatpush.msrb.mxu2 %v1777_v5 }
  0x18   :  { %304 = vmatpush.msrb.mxu1 %v1786_v6 }
  0x19   :  { %438 = vmatpush.msrb.mxu2 %v1786_v6 }
  0x1a   :  { %368 = vmatpush.msra.mxu1 %v1757_v0 }
  0x1c   :  { %369 = vmatpush.msra.mxu1 %v1765_v2 }
  0x1e   :  { %370 = vmatpush.msra.mxu1 %v1777_v5  ;;  %1469 = vmatmul.msk.f32.gmra.mxu0 %vm82_vm0, %v70_v4  ;;  %v72_v4 = vld [vmem:[%s2155_s0 + $0x20] sm:$0xff] }
  0x20   :  { %371 = vmatpush.msra.mxu1 %v1786_v6 }
  0x8b   :  { %v124_v9 = vpop.f32.mrf.mxu0 }
  0x8c   :  { %v125_v10 = vadd.f32 %v1812_v8, %v124_v9 }
  0x8e   :  { %v173_v11 = vpop.f32.mrf.mxu1 }
  0x8f   :  { %v176_v12 = vadd.f32 %v173_v11, %v125_v10 }
  0x91   :  { %v1475_v13 = vmul.f32 -1.442695, %v176_v12 }
  0x93   :  { %1528 = vpow2.f32 %v1475_v13  ;;  %v127_v41 = vpop.f32.mrf.mxu0 }
  0x94   :  { %v128_v42 = vadd.f32 %v1812_v8, %v127_v41 }
  0x99   :  { %v1529_v14 = vpop.eup %1528 }
  0x9a   :  { %v181_v15 = vadd.f32 1.0, %v1529_v14 }
  0x9c   :  { %1530 = vrcp.f32 %v181_v15  ;;  %v193_v21 = vand.u32 2147483648, %v181_v15  ;;  %v191_v23 = vand.u32 2147483647, %v181_v15  ;;  %vm187_vm5 = vweird.f32 %v181_v15 }
  0x9d   :  { %1532 = vtanh.f32 %v176_v12  ;;  %v130_v12 = vpop.f32.mrf.mxu0 }
  0x9e   :  { %v194_v26 = vor.u32 1.1754944e-38, %v193_v21  ;;  %vm192_vm7 = vcmp.eq.f32.partialorder %v191_v23, 8.507059e+37  ;;  %v131_v13 = vadd.f32 %v1812_v8, %v130_v12 }
  0xa2   :  { %v1531_v17 = vpop.eup %1530 }
  0xa3   :  { %v183_v19 = vmul.f32 %v1531_v17, %v181_v15  ;;  %vm188_vm3 = vweird.f32 %v1531_v17  ;;  %v1533_v28 = vpop.eup %1532 }
  0xa4   :  { %vm189_vm6 = vmor %vm187_vm5, %vm188_vm3 }
  0xa5   :  { %v184_v20 = vsub.f32 1.0, %v183_v19 }
  0xa7   :  { %v185_v22 = vmul.f32 %v1531_v17, %v184_v20 }
  0xa9   :  { %v186_v25 = vadd.f32 %v1531_v17, %v185_v22 }
  0xab   :  { %v190_v27 = vsel %vm189_vm6, %v1531_v17, %v186_v25 }
  0xac   :  { %v195_v29 = vsel %vm192_vm7, %v194_v26, %v190_v27 }
  0xad   :  { %v197_v30 = vsel %vm1816_vm4, %v1533_v28, %v195_v29 }
  0xae   :  { %200 = vrot.lane.b32.xlu0 %v197_v30, %s1662_s27  ;;  %v198_v33 = vmul.f32 0.0, %v197_v30 }
 0x120   :  { %v201_v31 = vpop.permute.xlu0 %200 }
 0x121   :  { %v203_v32 = vmul.f32 %v201_v31, %v197_v30 }
 0x123   :  { %205 = vrot.lane.b32.xlu0 %v203_v32, %s1663_s28 }
 0x195   :  { %v206_v34 = vpop.permute.xlu0 %205 }
 0x196   :  { %v208_v35 = vadd.f32 %v206_v34, %v198_v33 }
 0x198   :  { %1534 = vtanh.f32 %v208_v35 }
 0x19e   :  { %v1535_v36 = vpop.eup %1534 }
 0x19f   :  { %211 = vrot.lane.b32.xlu1 %v1535_v36, %s1662_s27 }
 0x211   :  { %v212_v37 = vpop.permute.xlu1 %211 }
 0x212   :  { %v214_v38 = vmul.f32 %v212_v37, %v197_v30 }
 0x214   :  { %216 = vrot.lane.b32.xlu1 %v214_v38, %s1663_s28 }
 0x286   :  { %v217_v40 = vpop.permute.xlu1 %216 }
 0x287   :  { %219 = vst.msk [vmem:[#allocation2] sm:$0xff] %vm152_vm8, %v217_v40  ;;  %1476 = vmatmul.msk.f32.vlgmr.msra.gmra.mxu2 %vm152_vm8, %v217_v40 }
 0x288   :  { %636 = vmatpush.msra.mxu2 %v1757_v0 }
 0x28a   :  { %637 = vmatpush.msra.mxu2 %v1765_v2 }
 0x28c   :  { %638 = vmatpush.msra.mxu2 %v1777_v5 }
 0x28e   :  { %639 = vmatpush.msra.mxu2 %v1786_v6 }
 0x30a   :  { %v239_v43 = vpop.f32.mrf.mxu2 }
 0x30b   :  { %v242_v44 = vadd.f32 %v239_v43, %v128_v42 }
 0x30d   :  { %v1477_v45 = vmul.f32 -1.442695, %v242_v44 }
 0x30f   :  { %1536 = vpow2.f32 %v1477_v45 }
 0x315   :  { %v1537_v46 = vpop.eup %1536 }
 0x316   :  { %v247_v47 = vadd.f32 1.0, %v1537_v46 }
 0x318   :  { %1538 = vrcp.f32 %v247_v47  ;;  %v259_v51 = vand.u32 2147483648, %v247_v47  ;;  %v257_v53 = vand.u32 2147483647, %v247_v47  ;;  %vm253_vm10 = vweird.f32 %v247_v47 }
 0x319   :  { %1540 = vtanh.f32 %v242_v44 }
 0x31a   :  { %v260_v55 = vor.u32 1.1754944e-38, %v259_v51  ;;  %vm258_vm12 = vcmp.eq.f32.partialorder %v257_v53, 8.507059e+37 }
 0x31e   :  { %v1539_v48 = vpop.eup %1538 }
 0x31f   :  { %v249_v49 = vmul.f32 %v1539_v48, %v247_v47  ;;  %vm254_vm9 = vweird.f32 %v1539_v48  ;;  %v1541_v57 = vpop.eup %1540 }
 0x320   :  { %vm255_vm11 = vmor %vm253_vm10, %vm254_vm9 }
 0x321   :  { %v250_v50 = vsub.f32 1.0, %v249_v49 }
 0x323   :  { %v251_v52 = vmul.f32 %v1539_v48, %v250_v50 }
 0x325   :  { %v252_v54 = vadd.f32 %v1539_v48, %v251_v52 }
 0x327   :  { %v256_v56 = vsel %vm255_vm11, %v1539_v48, %v252_v54 }
 0x328   :  { %v261_v58 = vsel %vm258_vm12, %v260_v55, %v256_v56 }
 0x329   :  { %v263_v59 = vsel %vm1816_vm4, %v1541_v57, %v261_v58 }
 0x32a   :  { %266 = vrot.lane.b32.xlu2 %v263_v59, %s1662_s27  ;;  %v264_v62 = vmul.f32 %v263_v59, %v208_v35  ;;  %v71_v35 = vld [vmem:[%s2155_s0 + $0x18] sm:$0xff] }
 0x32b   :  { %1470 = vmatmul.msk.f32.gmra.mxu0 %vm82_vm0, %v71_v35  ;;  %v700_v35 = vld [vmem:[%s2157_s4 + $0x18] sm:$0xff] }
 0x32c   :  { %741 = vmatpush.msrb.mxu3 %v700_v35 }
 0x333   :  { %1471 = vmatmul.msk.f32.gmra.mxu0 %vm82_vm0, %v72_v4 }
 0x384   :  { %v267_v60 = vpop.permute.xlu2 %266 }
 0x385   :  { %v269_v61 = vmul.f32 %v267_v60, %v263_v59 }
 0x387   :  { %271 = vrot.lane.b32.xlu2 %v269_v61, %s1663_s28 }
 0x3a8   :  { %v133_v39 = vpop.f32.mrf.mxu0 }
 0x3a9   :  { %v134_v40 = vadd.f32 %v1812_v8, %v133_v39  ;;  %v697_v39 = vld [vmem:[%s2157_s4] sm:$0xff] }
 0x3e1   :  { %v272_v63 = vpop.permute.xlu2 %271 }
 0x3e2   :  { %v274_v1 = vadd.f32 %v272_v63, %v264_v62 }
 0x3e4   :  { %1542 = vtanh.f32 %v274_v1 }
 0x3ea   :  { %v1543_v3 = vpop.eup %1542 }
 0x3eb   :  { %277 = vrot.lane.b32.xlu0 %v1543_v3, %s1662_s27 }
 0x45d   :  { %v278_v9 = vpop.permute.xlu0 %277 }
 0x45e   :  { %v280_v10 = vmul.f32 %v278_v9, %v263_v59 }
 0x460   :  { %282 = vrot.lane.b32.xlu1 %v280_v10, %s1663_s28  ;;  %v136_v10 = vpop.f32.mrf.mxu0 }
 0x4d2   :  { %v283_v11 = vpop.permute.xlu1 %282 }
 0x4d3   :  { %286 = vst.msk [vmem:[#allocation2 + $0x8] sm:$0xff] %vm152_vm8, %v283_v11  ;;  %1478 = vmatmul.msk.f32.vlgmr.msrb.gmra.mxu1 %vm152_vm8, %v283_v11  ;;  %v137_v11 = vadd.f32 %v1812_v8, %v136_v10 }
 0x4d4   :  { %569 = vmatpush.msrb.mxu1 %v1757_v0 }
 0x4d6   :  { %570 = vmatpush.msrb.mxu1 %v1765_v2 }
 0x4d8   :  { %571 = vmatpush.msrb.mxu1 %v1777_v5 }
 0x4da   :  { %572 = vmatpush.msrb.mxu1 %v1786_v6 }
 0x550   :  { %v306_v14 = vpop.f32.mrf.mxu1 }
 0x551   :  { %v309_v15 = vadd.f32 %v306_v14, %v131_v13 }
 0x553   :  { %v1479_v17 = vmul.f32 -1.442695, %v309_v15 }
 0x555   :  { %1544 = vpow2.f32 %v1479_v17 }
 0x55b   :  { %v1545_v18 = vpop.eup %1544 }
 0x55c   :  { %v314_v19 = vadd.f32 1.0, %v1545_v18 }
 0x55e   :  { %1546 = vrcp.f32 %v314_v19  ;;  %v326_v0 = vand.u32 2147483648, %v314_v19  ;;  %v324_v5 = vand.u32 2147483647, %v314_v19  ;;  %vm320_vm14 = vweird.f32 %v314_v19 }
 0x55f   :  { %1548 = vtanh.f32 %v309_v15 }
 0x560   :  { %v327_v6 = vor.u32 1.1754944e-38, %v326_v0  ;;  %vm325_vm1 = vcmp.eq.f32.partialorder %v324_v5, 8.507059e+37 }
 0x564   :  { %v1547_v20 = vpop.eup %1546 }
 0x565   :  { %v316_v21 = vmul.f32 %v1547_v20, %v314_v19  ;;  %vm321_vm13 = vweird.f32 %v1547_v20  ;;  %v1549_v26 = vpop.eup %1548 }
 0x566   :  { %vm322_vm15 = vmor %vm320_vm14, %vm321_vm13 }
 0x567   :  { %v317_v22 = vsub.f32 1.0, %v316_v21 }
 0x569   :  { %v318_v2 = vmul.f32 %v1547_v20, %v317_v22 }
 0x56b   :  { %v319_v23 = vadd.f32 %v1547_v20, %v318_v2 }
 0x56d   :  { %v323_v25 = vsel %vm322_vm15, %v1547_v20, %v319_v23 }
 0x56e   :  { %v328_v27 = vsel %vm325_vm1, %v327_v6, %v323_v25 }
 0x56f   :  { %v330_v28 = vsel %vm1816_vm4, %v1549_v26, %v328_v27 }
 0x570   :  { %333 = vrot.lane.b32.xlu2 %v330_v28, %s1662_s27  ;;  %v331_v31 = vmul.f32 %v330_v28, %v274_v1 }
 0x5ca   :  { %v334_v29 = vpop.permute.xlu2 %333 }
 0x5cb   :  { %v336_v30 = vmul.f32 %v334_v29, %v330_v28 }
 0x5cd   :  { %338 = vrot.lane.b32.xlu0 %v336_v30, %s1663_s28 }
 0x63f   :  { %v339_v32 = vpop.permute.xlu0 %338 }
 0x640   :  { %v341_v33 = vadd.f32 %v339_v32, %v331_v31 }
 0x642   :  { %1550 = vtanh.f32 %v341_v33 }
 0x648   :  { %v1551_v34 = vpop.eup %1550 }
 0x649   :  { %344 = vrot.lane.b32.xlu1 %v1551_v34, %s1662_s27 }
 0x6bb   :  { %v345_v36 = vpop.permute.xlu1 %344 }
 0x6bc   :  { %v347_v37 = vmul.f32 %v345_v36, %v330_v28  ;;  %v699_v36 = vld [vmem:[%s2157_s4 + $0x10] sm:$0xff] }
 0x6bd   :  { %742 = vmatpush.msrb.mxu3 %v699_v36 }
 0x6be   :  { %349 = vrot.lane.b32.xlu2 %v347_v37, %s1663_s28  ;;  %v73_v37 = vld [vmem:[%s2155_s0 + $0x28] sm:$0xff] }
 0x6bf   :  { %1472 = vmatmul.msk.f32.gmra.mxu0 %vm82_vm0, %v73_v37 }
 0x718   :  { %v350_v38 = vpop.permute.xlu2 %349 }
 0x719   :  { %353 = vst.msk [vmem:[#allocation2 + $0x10] sm:$0xff] %vm152_vm8, %v350_v38  ;;  %1480 = vmatmul.msk.f32.vlgmr.msra.gmra.mxu1 %vm152_vm8, %v350_v38  ;;  %v698_v38 = vld [vmem:[%s2157_s4 + $0x8] sm:$0xff] }
 0x71a   :  { %743 = vmatpush.msrb.mxu3 %v698_v38 }
 0x71c   :  { %744 = vmatpush.msrb.mxu3 %v697_v39 }
 0x796   :  { %v373_v41 = vpop.f32.mrf.mxu1 }
 0x797   :  { %v376_v42 = vadd.f32 %v373_v41, %v134_v40  ;;  %v689_v41 = vld [vmem:[#allocation2] sm:$0xff] }
 0x799   :  { %v1481_v43 = vmul.f32 -1.442695, %v376_v42 }
 0x79b   :  { %1552 = vpow2.f32 %v1481_v43  ;;  %v691_v43 = vld [vmem:[#allocation2 + $0x10] sm:$0xff] }
 0x7a1   :  { %v1553_v44 = vpop.eup %1552 }
 0x7a2   :  { %v381_v45 = vadd.f32 1.0, %v1553_v44 }
 0x7a4   :  { %1554 = vrcp.f32 %v381_v45  ;;  %v393_v49 = vand.u32 2147483648, %v381_v45  ;;  %v391_v51 = vand.u32 2147483647, %v381_v45  ;;  %vm387_vm3 = vweird.f32 %v381_v45 }
 0x7a5   :  { %1556 = vtanh.f32 %v376_v42  ;;  %v690_v42 = vld [vmem:[#allocation2 + $0x8] sm:$0xff] }
 0x7a6   :  { %v394_v53 = vor.u32 1.1754944e-38, %v393_v49  ;;  %vm392_vm6 = vcmp.eq.f32.partialorder %v391_v51, 8.507059e+37 }
 0x7aa   :  { %v1555_v46 = vpop.eup %1554 }
 0x7ab   :  { %v383_v47 = vmul.f32 %v1555_v46, %v381_v45  ;;  %vm388_vm2 = vweird.f32 %v1555_v46  ;;  %v1557_v55 = vpop.eup %1556 }
 0x7ac   :  { %vm389_vm5 = vmor %vm387_vm3, %vm388_vm2 }
 0x7ad   :  { %v384_v48 = vsub.f32 1.0, %v383_v47 }
 0x7af   :  { %v385_v50 = vmul.f32 %v1555_v46, %v384_v48 }
 0x7b1   :  { %v386_v52 = vadd.f32 %v1555_v46, %v385_v50 }
 0x7b3   :  { %v390_v54 = vsel %vm389_vm5, %v1555_v46, %v386_v52  ;;  %v139_v46 = vpop.f32.mrf.mxu0 }
 0x7b4   :  { %v395_v56 = vsel %vm392_vm6, %v394_v53, %v390_v54  ;;  %v140_v47 = vadd.f32 %v1812_v8, %v139_v46 }
 0x7b5   :  { %v397_v57 = vsel %vm1816_vm4, %v1557_v55, %v395_v56 }
 0x7b6   :  { %400 = vrot.lane.b32.xlu0 %v397_v57, %s1662_s27  ;;  %v398_v60 = vmul.f32 %v397_v57, %v341_v33 }
 0x828   :  { %v401_v58 = vpop.permute.xlu0 %400 }
 0x829   :  { %v403_v59 = vmul.f32 %v401_v58, %v397_v57 }
 0x82b   :  { %405 = vrot.lane.b32.xlu1 %v403_v59, %s1663_s28 }
 0x89d   :  { %v406_v61 = vpop.permute.xlu1 %405 }
 0x89e   :  { %v408_v62 = vadd.f32 %v406_v61, %v398_v60 }
 0x8a0   :  { %1558 = vtanh.f32 %v408_v62 }
 0x8a6   :  { %v1559_v63 = vpop.eup %1558 }
 0x8a7   :  { %411 = vrot.lane.b32.xlu2 %v1559_v63, %s1662_s27 }
 0x901   :  { %v412_v1 = vpop.permute.xlu2 %411 }
 0x902   :  { %v414_v3 = vmul.f32 %v412_v1, %v397_v57 }
 0x904   :  { %416 = vrot.lane.b32.xlu0 %v414_v3, %s1663_s28 }
 0x976   :  { %v417_v9 = vpop.permute.xlu0 %416 }
 0x977   :  { %420 = vst.msk [vmem:[#allocation2 + $0x18] sm:$0xff] %vm152_vm8, %v417_v9  ;;  %1482 = vmatmul.msk.f32.vlgmr.msrb.gmra.mxu2 %vm152_vm8, %v417_v9 }
 0x97e   :  { %v692_v44 = vld [vmem:[#allocation2 + $0x18] sm:$0xff] }
 0x9fa   :  { %v440_v12 = vpop.f32.mrf.mxu2 }
 0x9fb   :  { %v443_v13 = vadd.f32 %v440_v12, %v137_v11 }
 0x9fd   :  { %v1483_v14 = vmul.f32 -1.442695, %v443_v13 }
 0x9ff   :  { %1560 = vpow2.f32 %v1483_v14 }
 0xa05   :  { %v1561_v15 = vpop.eup %1560 }
 0xa06   :  { %v448_v17 = vadd.f32 1.0, %v1561_v15 }
 0xa08   :  { %1562 = vrcp.f32 %v448_v17  ;;  %v460_v21 = vand.u32 2147483648, %v448_v17  ;;  %v458_v0 = vand.u32 2147483647, %v448_v17  ;;  %vm454_vm9 = vweird.f32 %v448_v17 }
 0xa09   :  { %1564 = vtanh.f32 %v443_v13  ;;  %v74_v13 = vld [vmem:[%s2155_s0 + $0x30] sm:$0xff] }
 0xa0a   :  { %v461_v5 = vor.u32 1.1754944e-38, %v460_v21  ;;  %vm459_vm11 = vcmp.eq.f32.partialorder %v458_v0, 8.507059e+37  ;;  %1473 = vmatmul.msk.f32.gmra.mxu0 %vm82_vm0, %v74_v13 }
 0xa0e   :  { %v1563_v18 = vpop.eup %1562 }
 0xa0f   :  { %v450_v19 = vmul.f32 %v1563_v18, %v448_v17  ;;  %vm455_vm7 = vweird.f32 %v1563_v18  ;;  %v1565_v6 = vpop.eup %1564  ;;  %v1926_v17 = vld [vmem:[%s2159_s5 + $0x18] sm:$0xff] }
 0xa10   :  { %vm456_vm10 = vmor %vm454_vm9, %vm455_vm7  ;;  %786 = vmatpush.msra.mxu1 %v1926_v17  ;;  %850 = vmatpush.msrb.mxu2 %v1926_v17 }
 0xa11   :  { %v451_v20 = vsub.f32 1.0, %v450_v19  ;;  %v1938_v19 = vld [vmem:[%s2159_s5 + $0x8] sm:$0xff] }
 0xa13   :  { %v452_v22 = vmul.f32 %v1563_v18, %v451_v20  ;;  %v1945_v20 = vld [vmem:[%s2159_s5] sm:$0xff] }
 0xa15   :  { %v453_v2 = vadd.f32 %v1563_v18, %v452_v22 }
 0xa17   :  { %v457_v23 = vsel %vm456_vm10, %v1563_v18, %v453_v2  ;;  %v1931_v18 = vld [vmem:[%s2159_s5 + $0x10] sm:$0xff] }
 0xa18   :  { %v462_v25 = vsel %vm459_vm11, %v461_v5, %v457_v23  ;;  %787 = vmatpush.msra.mxu1 %v1931_v18  ;;  %851 = vmatpush.msrb.mxu2 %v1931_v18 }
 0xa19   :  { %v464_v26 = vsel %vm1816_vm4, %v1565_v6, %v462_v25  ;;  %v1967_v6 = vld [vmem:[%s2158_s6] ss:$0 sm:$0xff] }
 0xa1a   :  { %467 = vrot.lane.b32.xlu1 %v464_v26, %s1662_s27  ;;  %v465_v29 = vmul.f32 %v464_v26, %v408_v62  ;;  %788 = vmatpush.msra.mxu1 %v1938_v19 }
 0xa1b   :  { %852 = vmatpush.msrb.mxu2 %v1938_v19 }
 0xa1c   :  { %789 = vmatpush.msra.mxu1 %v1945_v20 }
 0xa1d   :  { %853 = vmatpush.msrb.mxu2 %v1945_v20 }
 0xa87   :  { %v142_v0 = vpop.f32.mrf.mxu0 }
 0xa88   :  { %v143_v2 = vadd.f32 %v1812_v8, %v142_v0 }
 0xa8c   :  { %v468_v27 = vpop.permute.xlu1 %467 }
 0xa8d   :  { %v470_v28 = vmul.f32 %v468_v27, %v464_v26 }
 0xa8f   :  { %472 = vrot.lane.b32.xlu2 %v470_v28, %s1663_s28 }
 0xae9   :  { %v473_v30 = vpop.permute.xlu2 %472 }
 0xaea   :  { %v475_v31 = vadd.f32 %v473_v30, %v465_v29 }
 0xaec   :  { %1566 = vtanh.f32 %v475_v31 }
 0xaf2   :  { %v1567_v32 = vpop.eup %1566 }
 0xaf3   :  { %478 = vrot.lane.b32.xlu0 %v1567_v32, %s1662_s27 }
 0xb65   :  { %v479_v33 = vpop.permute.xlu0 %478 }
 0xb66   :  { %v481_v34 = vmul.f32 %v479_v33, %v464_v26 }
 0xb68   :  { %483 = vrot.lane.b32.xlu1 %v481_v34, %s1663_s28 }
 0xbda   :  { %v484_v40 = vpop.permute.xlu1 %483 }
 0xbdb   :  { %487 = vst.msk [vmem:[#allocation2 + $0x20] sm:$0xff] %vm152_vm8, %v484_v40  ;;  %1484 = vmatmul.msk.f32.vlgmr.msra.gmra.mxu3 %vm152_vm8, %v484_v40 }
 0xbe2   :  { %v693_v45 = vld [vmem:[#allocation2 + $0x20] sm:$0xff] }
 0xbe3   :  { %1490 = vmatmul.msk.f32.vlgmr.msrb.gmra.mxu3 %vm152_vm8, %v689_v41 }
 0xbeb   :  { %1491 = vmatmul.msk.f32.gmra.mxu3 %vm152_vm8, %v690_v42 }
 0xbf3   :  { %1492 = vmatmul.msk.f32.gmra.mxu3 %vm152_vm8, %v691_v43 }
 0xbfb   :  { %1493 = vmatmul.msk.f32.gmra.mxu3 %vm152_vm8, %v692_v44 }
 0xc03   :  { %1494 = vmatmul.msk.f32.gmra.mxu3 %vm152_vm8, %v693_v45 }
 0xc5e   :  { %v507_v48 = vpop.f32.mrf.mxu3 }
 0xc5f   :  { %v510_v49 = vadd.f32 %v507_v48, %v140_v47 }
 0xc61   :  { %v1485_v50 = vmul.f32 -1.442695, %v510_v49 }
 0xc63   :  { %1568 = vpow2.f32 %v1485_v50 }
 0xc66   :  { %v746_v26 = vpop.f32.mrf.mxu3 }
 0xc67   :  { %v747_v27 = vadd.f32 %v1967_v6, %v746_v26 }
 0xc69   :  { %v1569_v51 = vpop.eup %1568 }
 0xc6a   :  { %v515_v52 = vadd.f32 1.0, %v1569_v51 }
 0xc6c   :  { %1570 = vrcp.f32 %v515_v52  ;;  %v527_v56 = vand.u32 2147483648, %v515_v52  ;;  %v525_v58 = vand.u32 2147483647, %v515_v52  ;;  %vm521_vm13 = vweird.f32 %v515_v52 }
 0xc6d   :  { %1572 = vtanh.f32 %v510_v49 }
 0xc6e   :  { %v528_v60 = vor.u32 1.1754944e-38, %v527_v56  ;;  %vm526_vm15 = vcmp.eq.f32.partialorder %v525_v58, 8.507059e+37 }
 0xc72   :  { %v1571_v53 = vpop.eup %1570 }
 0xc73   :  { %v517_v54 = vmul.f32 %v1571_v53, %v515_v52  ;;  %vm522_vm12 = vweird.f32 %v1571_v53  ;;  %v1573_v62 = vpop.eup %1572 }
 0xc74   :  { %vm523_vm14 = vmor %vm521_vm13, %vm522_vm12 }
 0xc75   :  { %v518_v55 = vsub.f32 1.0, %v517_v54 }
 0xc77   :  { %v519_v57 = vmul.f32 %v1571_v53, %v518_v55 }
 0xc79   :  { %v520_v59 = vadd.f32 %v1571_v53, %v519_v57 }
 0xc7b   :  { %v524_v61 = vsel %vm523_vm14, %v1571_v53, %v520_v59 }
 0xc7c   :  { %v529_v63 = vsel %vm526_vm15, %v528_v60, %v524_v61 }
 0xc7d   :  { %v531_v1 = vsel %vm1816_vm4, %v1573_v62, %v529_v63 }
 0xc7e   :  { %534 = vrot.lane.b32.xlu2 %v531_v1, %s1662_s27  ;;  %v532_v9 = vmul.f32 %v531_v1, %v475_v31 }
 0xcd8   :  { %v535_v3 = vpop.permute.xlu2 %534 }
 0xcd9   :  { %v537_v4 = vmul.f32 %v535_v3, %v531_v1 }
 0xcdb   :  { %539 = vrot.lane.b32.xlu0 %v537_v4, %s1663_s28 }
 0xd4d   :  { %v540_v10 = vpop.permute.xlu0 %539 }
 0xd4e   :  { %v1914_v11 = vadd.f32 %v540_v10, %v532_v9 }
 0xd50   :  { %1574 = vtanh.f32 %v1914_v11 }
 0xd56   :  { %v1575_v12 = vpop.eup %1574 }
 0xd57   :  { %545 = vrot.lane.b32.xlu1 %v1575_v12, %s1662_s27 }
 0xdc9   :  { %v546_v14 = vpop.permute.xlu1 %545 }
 0xdca   :  { %v548_v15 = vmul.f32 %v546_v14, %v531_v1 }
 0xdcc   :  { %550 = vrot.lane.b32.xlu2 %v548_v15, %s1663_s28 }
 0xe26   :  { %v551_v21 = vpop.permute.xlu2 %550 }
 0xe27   :  { %554 = vst.msk [vmem:[#allocation2 + $0x28] sm:$0xff] %vm152_vm8, %v551_v21  ;;  %1486 = vmatmul.msk.f32.vlgmr.msrb.gmra.mxu1 %vm152_vm8, %v551_v21  ;;  %v75_v21 = vld [vmem:[%s2155_s0 + $0x38] sm:$0xff] }
 0xe28   :  { %914 = vmatpush.msrb.mxu1 %v1926_v17  ;;  %1474 = vmatmul.msk.f32.gmra.mxu0 %vm82_vm0, %v75_v21 }
 0xe2a   :  { %915 = vmatpush.msrb.mxu1 %v1931_v18 }
 0xe2c   :  { %916 = vmatpush.msrb.mxu1 %v1938_v19 }
 0xe2e   :  { %v694_v22 = vld [vmem:[#allocation2 + $0x28] sm:$0xff]  ;;  %917 = vmatpush.msrb.mxu1 %v1945_v20 }
 0xe2f   :  { %1495 = vmatmul.msk.f32.gmra.mxu3 %vm152_vm8, %v694_v22  ;;  %790 = vmatmul.f32.vlgmr.msra.gmra.mxu1 %v1661_v7 }
 0xe30   :  { %1042 = vmatpush.msra.mxu1 %v1926_v17 }
 0xe32   :  { %1043 = vmatpush.msra.mxu1 %v1931_v18 }
 0xe34   :  { %1044 = vmatpush.msra.mxu1 %v1938_v19 }
 0xe36   :  { %1045 = vmatpush.msra.mxu1 %v1945_v20 }
 0xea4   :  { %v574_v5 = vpop.f32.mrf.mxu1 }
 0xea5   :  { %v577_v23 = vadd.f32 %v574_v5, %v143_v2 }
 0xea7   :  { %v1487_v25 = vmul.f32 -1.442695, %v577_v23 }
 0xea9   :  { %1576 = vpow2.f32 %v1487_v25 }
 0xeac   :  { %v791_v28 = vpop.f32.mrf.mxu1 }
 0xead   :  { %v794_v29 = vadd.f32 %v791_v28, %v747_v27 }
 0xeaf   :  { %v1577_v30 = vpop.eup %1576  ;;  %v1498_v31 = vmul.f32 -1.442695, %v794_v29 }
 0xeb0   :  { %v582_v32 = vadd.f32 1.0, %v1577_v30 }
 0xeb1   :  { %1578 = vpow2.f32 %v1498_v31 }
 0xeb2   :  { %1580 = vrcp.f32 %v582_v32  ;;  %v594_v37 = vand.u32 2147483648, %v582_v32  ;;  %v592_v39 = vand.u32 2147483647, %v582_v32  ;;  %vm588_vm2 = vweird.f32 %v582_v32 }
 0xeb4   :  { %v595_v42 = vor.u32 1.1754944e-38, %v594_v37  ;;  %vm593_vm5 = vcmp.eq.f32.partialorder %v592_v39, 8.507059e+37 }
 0xeb7   :  { %v1579_v8 = vpop.eup %1578 }
 0xeb8   :  { %v1581_v33 = vpop.eup %1580  ;;  %v799_v34 = vadd.f32 1.0, %v1579_v8 }
 0xeb9   :  { %v584_v35 = vmul.f32 %v1581_v33, %v582_v32  ;;  %vm589_vm1 = vweird.f32 %v1581_v33 }
 0xeba   :  { %1582 = vrcp.f32 %v799_v34  ;;  %vm590_vm3 = vmor %vm588_vm2, %vm589_vm1  ;;  %v811_v49 = vand.u32 2147483648, %v799_v34  ;;  %v809_v51 = vand.u32 2147483647, %v799_v34  ;;  %vm805_vm7 = vweird.f32 %v799_v34 }
 0xebb   :  { %v585_v36 = vsub.f32 1.0, %v584_v35  ;;  %1584 = vtanh.f32 %v577_v23  ;;  %v749_v23 = vpop.f32.mrf.mxu3 }
 0xebc   :  { %1586 = vtanh.f32 %v794_v29  ;;  %v812_v53 = vor.u32 1.1754944e-38, %v811_v49  ;;  %vm810_vm10 = vcmp.eq.f32.partialorder %v809_v51, 8.507059e+37  ;;  %v750_v25 = vadd.f32 %v1967_v6, %v749_v23 }
 0xebd   :  { %v586_v38 = vmul.f32 %v1581_v33, %v585_v36 }
 0xebf   :  { %v587_v40 = vadd.f32 %v1581_v33, %v586_v38 }
 0xec0   :  { %v1583_v41 = vpop.eup %1582 }
 0xec1   :  { %v591_v43 = vsel %vm590_vm3, %v1581_v33, %v587_v40  ;;  %v801_v44 = vmul.f32 %v1583_v41, %v799_v34  ;;  %v1585_v45 = vpop.eup %1584  ;;  %vm806_vm6 = vweird.f32 %v1583_v41 }
 0xec2   :  { %v596_v46 = vsel %vm593_vm5, %v595_v42, %v591_v43  ;;  %vm807_vm9 = vmor %vm805_vm7, %vm806_vm6  ;;  %v1587_v55 = vpop.eup %1586 }
 0xec3   :  { %v598_v47 = vsel %vm1816_vm4, %v1585_v45, %v596_v46  ;;  %v802_v48 = vsub.f32 1.0, %v801_v44  ;;  %v752_v51 = vpop.f32.mrf.mxu3 }
 0xec4   :  { %601 = vrot.lane.b32.xlu0 %v598_v47, %s1662_s27  ;;  %v599_v62 = vmul.f32 %v598_v47, %v1914_v11 }
 0xec5   :  { %v803_v50 = vmul.f32 %v1583_v41, %v802_v48 }
 0xec7   :  { %v804_v52 = vadd.f32 %v1583_v41, %v803_v50 }
 0xec9   :  { %v808_v54 = vsel %vm807_vm9, %v1583_v41, %v804_v52  ;;  %v753_v52 = vadd.f32 %v1967_v6, %v752_v51 }
 0xeca   :  { %v813_v56 = vsel %vm810_vm10, %v812_v53, %v808_v54 }
 0xecb   :  { %v815_v57 = vsel %vm1816_vm4, %v1587_v55, %v813_v56 }
 0xecc   :  { %818 = vrot.lane.b32.xlu1 %v815_v57, %s1662_s27  ;;  %v816_v4 = vmul.f32 0.0, %v815_v57 }
 0xf36   :  { %v602_v58 = vpop.permute.xlu0 %601 }
 0xf37   :  { %v604_v59 = vmul.f32 %v602_v58, %v598_v47 }
 0xf39   :  { %606 = vrot.lane.b32.xlu2 %v604_v59, %s1663_s28 }
 0xf3e   :  { %v819_v60 = vpop.permute.xlu1 %818 }
 0xf3f   :  { %v821_v61 = vmul.f32 %v819_v60, %v815_v57 }
 0xf41   :  { %823 = vrot.lane.b32.xlu0 %v821_v61, %s1663_s28 }
 0xf93   :  { %v607_v63 = vpop.permute.xlu2 %606 }
 0xf94   :  { %v1979_v1 = vadd.f32 %v607_v63, %v599_v62 }
 0xf96   :  { %1588 = vtanh.f32 %v1979_v1 }
 0xf9c   :  { %v1589_v3 = vpop.eup %1588 }
 0xf9d   :  { %612 = vrot.lane.b32.xlu1 %v1589_v3, %s1662_s27 }
 0xfb3   :  { %v824_v9 = vpop.permute.xlu0 %823 }
 0xfb4   :  { %v826_v10 = vadd.f32 %v824_v9, %v816_v4 }
 0xfb6   :  { %1590 = vtanh.f32 %v826_v10 }
 0xfbc   :  { %v1591_v12 = vpop.eup %1590 }
 0xfbd   :  { %829 = vrot.lane.b32.xlu2 %v1591_v12, %s1662_s27 }
0x100f   :  { %v613_v13 = vpop.permute.xlu1 %612 }
0x1010   :  { %v615_v14 = vmul.f32 %v613_v13, %v598_v47 }
0x1012   :  { %617 = vrot.lane.b32.xlu0 %v615_v14, %s1663_s28 }
0x1017   :  { %v830_v11 = vpop.permute.xlu2 %829 }
0x1018   :  { %v832_v15 = vmul.f32 %v830_v11, %v815_v57 }
0x101a   :  { %834 = vrot.lane.b32.xlu1 %v832_v15, %s1663_s28 }
0x1084   :  { %v618_v22 = vpop.permute.xlu0 %617 }
0x1085   :  { %621 = vst.msk [vmem:[#allocation2 + $0x30] sm:$0xff] %vm152_vm8, %v618_v22  ;;  %1488 = vmatmul.msk.f32.vlgmr.msra.gmra.mxu2 %vm152_vm8, %v618_v22 }
0x1086   :  { %978 = vmatpush.msra.mxu2 %v1926_v17 }
0x1088   :  { %979 = vmatpush.msra.mxu2 %v1931_v18 }
0x108a   :  { %980 = vmatpush.msra.mxu2 %v1938_v19 }
0x108c   :  { %v835_v0 = vpop.permute.xlu1 %834  ;;  %v695_v2 = vld [vmem:[#allocation2 + $0x30] sm:$0xff]  ;;  %981 = vmatpush.msra.mxu2 %v1945_v20 }
0x108d   :  { %1496 = vmatmul.msk.f32.gmra.mxu3 %vm152_vm8, %v695_v2  ;;  %1499 = vmatmul.msk.f32.vlgmr.msrb.gmra.mxu2 %vm152_vm8, %v835_v0 }
0x108e   :  { %1106 = vmatpush.msrb.mxu2 %v1926_v17 }
0x1090   :  { %1107 = vmatpush.msrb.mxu2 %v1931_v18 }
0x1092   :  { %1108 = vmatpush.msrb.mxu2 %v1938_v19 }
0x1094   :  { %1109 = vmatpush.msrb.mxu2 %v1945_v20 }
0x1108   :  { %v2002_v5 = vpop.f32.mrf.mxu2 }
0x1110   :  { %v855_v26 = vpop.f32.mrf.mxu2 }
0x1111   :  { %v858_v27 = vadd.f32 %v855_v26, %v750_v25  ;;  %v755_v26 = vpop.f32.mrf.mxu3 }
0x1113   :  { %v1500_v28 = vmul.f32 -1.442695, %v858_v27 }
0x1115   :  { %1592 = vpow2.f32 %v1500_v28 }
0x111b   :  { %v1593_v29 = vpop.eup %1592 }
0x111c   :  { %v863_v30 = vadd.f32 1.0, %v1593_v29 }
0x111e   :  { %1594 = vrcp.f32 %v863_v30  ;;  %v875_v33 = vand.u32 2147483648, %v863_v30  ;;  %v873_v35 = vand.u32 2147483647, %v863_v30  ;;  %vm869_vm12 = vweird.f32 %v863_v30 }
0x111f   :  { %1596 = vtanh.f32 %v858_v27  ;;  %v756_v27 = vadd.f32 %v1967_v6, %v755_v26 }
0x1120   :  { %v876_v37 = vor.u32 1.1754944e-38, %v875_v33  ;;  %vm874_vm14 = vcmp.eq.f32.partialorder %v873_v35, 8.507059e+37 }
0x1124   :  { %v1595_v31 = vpop.eup %1594 }
0x1125   :  { %v865_v32 = vmul.f32 %v1595_v31, %v863_v30  ;;  %vm870_vm11 = vweird.f32 %v1595_v31  ;;  %v1597_v39 = vpop.eup %1596 }
0x1126   :  { %vm871_vm13 = vmor %vm869_vm12, %vm870_vm11 }
0x1127   :  { %v866_v8 = vsub.f32 1.0, %v865_v32 }
0x1129   :  { %v867_v34 = vmul.f32 %v1595_v31, %v866_v8 }
0x112b   :  { %v868_v36 = vadd.f32 %v1595_v31, %v867_v34 }
0x112d   :  { %v872_v38 = vsel %vm871_vm13, %v1595_v31, %v868_v36 }
0x112e   :  { %v877_v40 = vsel %vm874_vm14, %v876_v37, %v872_v38 }
0x112f   :  { %v879_v41 = vsel %vm1816_vm4, %v1597_v39, %v877_v40 }
0x1130   :  { %882 = vrot.lane.b32.xlu2 %v879_v41, %s1662_s27  ;;  %v880_v44 = vmul.f32 %v879_v41, %v826_v10 }
0x118a   :  { %v883_v42 = vpop.permute.xlu2 %882 }
0x118b   :  { %v885_v43 = vmul.f32 %v883_v42, %v879_v41 }
0x118d   :  { %887 = vrot.lane.b32.xlu0 %v885_v43, %s1663_s28 }
0x11ff   :  { %v888_v45 = vpop.permute.xlu0 %887 }
0x1200   :  { %v890_v46 = vadd.f32 %v888_v45, %v880_v44 }
0x1202   :  { %1598 = vtanh.f32 %v890_v46 }
0x1208   :  { %v1599_v47 = vpop.eup %1598 }
0x1209   :  { %893 = vrot.lane.b32.xlu1 %v1599_v47, %s1662_s27 }
0x127b   :  { %v894_v48 = vpop.permute.xlu1 %893 }
0x127c   :  { %v896_v49 = vmul.f32 %v894_v48, %v879_v41 }
0x127e   :  { %898 = vrot.lane.b32.xlu2 %v896_v49, %s1663_s28  ;;  %v758_v49 = vpop.f32.mrf.mxu3 }
0x12d8   :  { %v899_v50 = vpop.permute.xlu2 %898 }
0x12d9   :  { %1501 = vmatmul.msk.f32.vlgmr.msrb.gmra.mxu1 %vm152_vm8, %v899_v50  ;;  %v759_v50 = vadd.f32 %v1967_v6, %v758_v49 }
0x12da   :  { %1170 = vmatpush.msrb.mxu1 %v1926_v17 }
0x12dc   :  { %1171 = vmatpush.msrb.mxu1 %v1931_v18 }
0x12de   :  { %1172 = vmatpush.msrb.mxu1 %v1938_v19 }
0x12e0   :  { %1173 = vmatpush.msrb.mxu1 %v1945_v20 }
0x1356   :  { %v919_v53 = vpop.f32.mrf.mxu1 }
0x1357   :  { %v922_v54 = vadd.f32 %v919_v53, %v753_v52 }
0x1359   :  { %v1502_v55 = vmul.f32 -1.442695, %v922_v54 }
0x135b   :  { %1600 = vpow2.f32 %v1502_v55 }
0x1361   :  { %v1601_v56 = vpop.eup %1600 }
0x1362   :  { %v927_v57 = vadd.f32 1.0, %v1601_v56 }
0x1364   :  { %1602 = vrcp.f32 %v927_v57  ;;  %v939_v61 = vand.u32 2147483648, %v927_v57  ;;  %v937_v63 = vand.u32 2147483647, %v927_v57  ;;  %vm933_vm1 = vweird.f32 %v927_v57 }
0x1365   :  { %1604 = vtanh.f32 %v922_v54 }
0x1366   :  { %v940_v4 = vor.u32 1.1754944e-38, %v939_v61  ;;  %vm938_vm3 = vcmp.eq.f32.partialorder %v937_v63, 8.507059e+37 }
0x136a   :  { %v1603_v58 = vpop.eup %1602 }
0x136b   :  { %v929_v59 = vmul.f32 %v1603_v58, %v927_v57  ;;  %vm934_vm15 = vweird.f32 %v1603_v58  ;;  %v1605_v10 = vpop.eup %1604 }
0x136c   :  { %vm935_vm2 = vmor %vm933_vm1, %vm934_vm15 }
0x136d   :  { %v930_v60 = vsub.f32 1.0, %v929_v59 }
0x136f   :  { %v931_v62 = vmul.f32 %v1603_v58, %v930_v60 }
0x1371   :  { %v932_v3 = vadd.f32 %v1603_v58, %v931_v62 }
0x1373   :  { %v936_v9 = vsel %vm935_vm2, %v1603_v58, %v932_v3 }
0x1374   :  { %v941_v12 = vsel %vm938_vm3, %v940_v4, %v936_v9 }
0x1375   :  { %v943_v13 = vsel %vm1816_vm4, %v1605_v10, %v941_v12 }
0x1376   :  { %946 = vrot.lane.b32.xlu0 %v943_v13, %s1662_s27  ;;  %v944_v15 = vmul.f32 %v943_v13, %v890_v46 }
0x13e8   :  { %v947_v14 = vpop.permute.xlu0 %946 }
0x13e9   :  { %v949_v11 = vmul.f32 %v947_v14, %v943_v13 }
0x13eb   :  { %951 = vrot.lane.b32.xlu1 %v949_v11, %s1663_s28 }
0x145d   :  { %v952_v21 = vpop.permute.xlu1 %951 }
0x145e   :  { %v954_v22 = vadd.f32 %v952_v21, %v944_v15 }
0x1460   :  { %1606 = vtanh.f32 %v954_v22 }
0x1466   :  { %v1607_v0 = vpop.eup %1606 }
0x1467   :  { %957 = vrot.lane.b32.xlu2 %v1607_v0, %s1662_s27 }
0x14c1   :  { %v958_v2 = vpop.permute.xlu2 %957 }
0x14c2   :  { %v960_v23 = vmul.f32 %v958_v2, %v943_v13 }
0x14c4   :  { %962 = vrot.lane.b32.xlu0 %v960_v23, %s1663_s28  ;;  %v761_v23 = vpop.f32.mrf.mxu3 }
0x1536   :  { %v963_v25 = vpop.permute.xlu0 %962 }
0x1537   :  { %1503 = vmatmul.msk.f32.vlgmr.msra.gmra.mxu2 %vm152_vm8, %v963_v25  ;;  %v762_v25 = vadd.f32 %v1967_v6, %v761_v23 }
0x1538   :  { %1234 = vmatpush.msra.mxu2 %v1926_v17 }
0x153a   :  { %1235 = vmatpush.msra.mxu2 %v1931_v18 }
0x153c   :  { %1236 = vmatpush.msra.mxu2 %v1938_v19 }
0x153e   :  { %1237 = vmatpush.msra.mxu2 %v1945_v20 }
0x15ba   :  { %v983_v28 = vpop.f32.mrf.mxu2 }
0x15bb   :  { %v986_v29 = vadd.f32 %v983_v28, %v756_v27 }
0x15bd   :  { %v1504_v30 = vmul.f32 -1.442695, %v986_v29 }
0x15bf   :  { %1608 = vpow2.f32 %v1504_v30 }
0x15c5   :  { %v1609_v31 = vpop.eup %1608 }
0x15c6   :  { %v991_v32 = vadd.f32 1.0, %v1609_v31 }
0x15c8   :  { %1610 = vrcp.f32 %v991_v32  ;;  %v1003_v17 = vand.u32 2147483648, %v991_v32  ;;  %v1001_v19 = vand.u32 2147483647, %v991_v32  ;;  %vm997_vm6 = vweird.f32 %v991_v32 }
0x15c9   :  { %1612 = vtanh.f32 %v986_v29 }
0x15ca   :  { %v1004_v20 = vor.u32 1.1754944e-38, %v1003_v17  ;;  %vm1002_vm9 = vcmp.eq.f32.partialorder %v1001_v19, 8.507059e+37 }
0x15ce   :  { %v1611_v8 = vpop.eup %1610 }
0x15cf   :  { %v993_v33 = vmul.f32 %v1611_v8, %v991_v32  ;;  %vm998_vm5 = vweird.f32 %v1611_v8  ;;  %v1613_v37 = vpop.eup %1612 }
0x15d0   :  { %vm999_vm7 = vmor %vm997_vm6, %vm998_vm5 }
0x15d1   :  { %v994_v34 = vsub.f32 1.0, %v993_v33 }
0x15d3   :  { %v995_v18 = vmul.f32 %v1611_v8, %v994_v34 }
0x15d5   :  { %v996_v35 = vadd.f32 %v1611_v8, %v995_v18 }
0x15d7   :  { %v1000_v36 = vsel %vm999_vm7, %v1611_v8, %v996_v35 }
0x15d8   :  { %v1005_v38 = vsel %vm1002_vm9, %v1004_v20, %v1000_v36 }
0x15d9   :  { %v1007_v39 = vsel %vm1816_vm4, %v1613_v37, %v1005_v38  ;;  %v145_v38 = vpop.f32.mrf.mxu0 }
0x15da   :  { %1010 = vrot.lane.b32.xlu1 %v1007_v39, %s1662_s27  ;;  %v1008_v42 = vmul.f32 %v1007_v39, %v954_v22 }
0x164c   :  { %v1011_v40 = vpop.permute.xlu1 %1010 }
0x164d   :  { %v1013_v41 = vmul.f32 %v1011_v40, %v1007_v39 }
0x164f   :  { %1015 = vrot.lane.b32.xlu2 %v1013_v41, %s1663_s28 }
0x16a9   :  { %v1016_v43 = vpop.permute.xlu2 %1015 }
0x16aa   :  { %v1018_v44 = vadd.f32 %v1016_v43, %v1008_v42 }
0x16ac   :  { %1614 = vtanh.f32 %v1018_v44 }
0x16b2   :  { %v1615_v45 = vpop.eup %1614 }
0x16b3   :  { %1021 = vrot.lane.b32.xlu0 %v1615_v45, %s1662_s27 }
0x1725   :  { %v1022_v46 = vpop.permute.xlu0 %1021 }
0x1726   :  { %v1024_v47 = vmul.f32 %v1022_v46, %v1007_v39  ;;  %v1660_v39 = vld [vmem:[%s2156_s3] ss:$0 sm:$0xff] }
0x1727   :  { %v146_v40 = vadd.f32 %v1660_v39, %v145_v38 }
0x1728   :  { %1026 = vrot.lane.b32.xlu1 %v1024_v47, %s1663_s28 }
0x1729   :  { %v644_v41 = vadd.f32 %v2002_v5, %v146_v40 }
0x172b   :  { %v1489_v42 = vmul.f32 -1.442695, %v644_v41 }
0x179a   :  { %v1027_v48 = vpop.permute.xlu1 %1026 }
0x179b   :  { %1505 = vmatmul.msk.f32.vlgmr.msra.gmra.mxu1 %vm152_vm8, %v1027_v48 }
0x1818   :  { %v1047_v51 = vpop.f32.mrf.mxu1 }
0x1819   :  { %v1050_v52 = vadd.f32 %v1047_v51, %v759_v50 }
0x181b   :  { %v1506_v53 = vmul.f32 -1.442695, %v1050_v52 }
0x181d   :  { %1616 = vpow2.f32 %v1506_v53 }
0x1823   :  { %v1617_v54 = vpop.eup %1616 }
0x1824   :  { %v1055_v55 = vadd.f32 1.0, %v1617_v54 }
0x1826   :  { %1618 = vrcp.f32 %v1055_v55  ;;  %v1067_v59 = vand.u32 2147483648, %v1055_v55  ;;  %v1065_v61 = vand.u32 2147483647, %v1055_v55  ;;  %vm1061_vm11 = vweird.f32 %v1055_v55 }
0x1827   :  { %1620 = vtanh.f32 %v1050_v52 }
0x1828   :  { %v1068_v63 = vor.u32 1.1754944e-38, %v1067_v59  ;;  %vm1066_vm13 = vcmp.eq.f32.partialorder %v1065_v61, 8.507059e+37 }
0x182c   :  { %v1619_v56 = vpop.eup %1618 }
0x182d   :  { %v1057_v57 = vmul.f32 %v1619_v56, %v1055_v55  ;;  %vm1062_vm10 = vweird.f32 %v1619_v56  ;;  %v1621_v4 = vpop.eup %1620 }
0x182e   :  { %vm1063_vm12 = vmor %vm1061_vm11, %vm1062_vm10 }
0x182f   :  { %v1058_v58 = vsub.f32 1.0, %v1057_v57 }
0x1831   :  { %v1059_v60 = vmul.f32 %v1619_v56, %v1058_v58 }
0x1833   :  { %v1060_v62 = vadd.f32 %v1619_v56, %v1059_v60 }
0x1835   :  { %v1064_v3 = vsel %vm1063_vm12, %v1619_v56, %v1060_v62 }
0x1836   :  { %v1069_v9 = vsel %vm1066_vm13, %v1068_v63, %v1064_v3 }
0x1837   :  { %v1071_v10 = vsel %vm1816_vm4, %v1621_v4, %v1069_v9 }
0x1838   :  { %1074 = vrot.lane.b32.xlu2 %v1071_v10, %s1662_s27  ;;  %v1072_v14 = vmul.f32 %v1071_v10, %v1018_v44 }
0x1892   :  { %v1075_v12 = vpop.permute.xlu2 %1074 }
0x1893   :  { %v1077_v13 = vmul.f32 %v1075_v12, %v1071_v10 }
0x1895   :  { %1079 = vrot.lane.b32.xlu0 %v1077_v13, %s1663_s28 }
0x1907   :  { %v1080_v11 = vpop.permute.xlu0 %1079 }
0x1908   :  { %v2041_v15 = vadd.f32 %v1080_v11, %v1072_v14 }
0x190a   :  { %1622 = vtanh.f32 %v2041_v15 }
0x1910   :  { %v1623_v21 = vpop.eup %1622 }
0x1911   :  { %1085 = vrot.lane.b32.xlu1 %v1623_v21, %s1662_s27 }
0x1983   :  { %v1086_v22 = vpop.permute.xlu1 %1085 }
0x1984   :  { %v1088_v0 = vmul.f32 %v1086_v22, %v1071_v10  ;;  %v764_v10 = vpop.f32.mrf.mxu3 }
0x1985   :  { %v765_v12 = vadd.f32 %v1967_v6, %v764_v10  ;;  %v1284_v10 = vld [vmem:[%s2160_s7 + $0x18] sm:$0xff] }
0x1986   :  { %1090 = vrot.lane.b32.xlu2 %v1088_v0, %s1663_s28  ;;  %1306 = vmatpush.msra.mxu1 %v1284_v10 }
0x1988   :  { %1307 = vmatpush.msra.mxu1 %v1283_v24 }
0x19e0   :  { %v1091_v2 = vpop.permute.xlu2 %1090 }
0x19e1   :  { %1507 = vmatmul.msk.f32.vlgmr.msrb.gmra.mxu2 %vm152_vm8, %v1091_v2 }
0x1a64   :  { %v1111_v26 = vpop.f32.mrf.mxu2 }
0x1a65   :  { %v1114_v27 = vadd.f32 %v1111_v26, %v762_v25 }
0x1a67   :  { %v1508_v28 = vmul.f32 -1.442695, %v1114_v27 }
0x1a69   :  { %1624 = vpow2.f32 %v1508_v28 }
0x1a6f   :  { %v1625_v29 = vpop.eup %1624 }
0x1a70   :  { %v1119_v30 = vadd.f32 1.0, %v1625_v29 }
0x1a72   :  { %1626 = vrcp.f32 %v1119_v30  ;;  %v1131_v33 = vand.u32 2147483648, %v1119_v30  ;;  %v1129_v17 = vand.u32 2147483647, %v1119_v30  ;;  %vm1125_vm15 = vweird.f32 %v1119_v30 }
0x1a73   :  { %1628 = vtanh.f32 %v1114_v27 }
0x1a74   :  { %v1132_v19 = vor.u32 1.1754944e-38, %v1131_v33  ;;  %vm1130_vm2 = vcmp.eq.f32.partialorder %v1129_v17, 8.507059e+37  ;;  %1630 = vpow2.f32 %v1489_v42 }
0x1a78   :  { %v1627_v31 = vpop.eup %1626 }
0x1a79   :  { %v1121_v32 = vmul.f32 %v1627_v31, %v1119_v30  ;;  %vm1126_vm14 = vweird.f32 %v1627_v31  ;;  %v1629_v20 = vpop.eup %1628 }
0x1a7a   :  { %vm1127_vm1 = vmor %vm1125_vm15, %vm1126_vm14  ;;  %v1631_v43 = vpop.eup %1630 }
0x1a7b   :  { %v1122_v8 = vsub.f32 1.0, %v1121_v32  ;;  %v649_v44 = vadd.f32 1.0, %v1631_v43 }
0x1a7d   :  { %v1123_v34 = vmul.f32 %v1627_v31, %v1122_v8  ;;  %1632 = vrcp.f32 %v649_v44  ;;  %v661_v52 = vand.u32 2147483648, %v649_v44  ;;  %vm655_vm5 = vweird.f32 %v649_v44 }
0x1a7e   :  { %v659_v53 = vand.u32 2147483647, %v649_v44  ;;  %1634 = vtanh.f32 %v644_v41 }
0x1a7f   :  { %v1124_v18 = vadd.f32 %v1627_v31, %v1123_v34  ;;  %v662_v54 = vor.u32 1.1754944e-38, %v661_v52 }
0x1a80   :  { %vm660_vm7 = vcmp.eq.f32.partialorder %v659_v53, 8.507059e+37 }
0x1a81   :  { %v1128_v35 = vsel %vm1127_vm1, %v1627_v31, %v1124_v18 }
0x1a82   :  { %v1133_v36 = vsel %vm1130_vm2, %v1132_v19, %v1128_v35 }
0x1a83   :  { %v1135_v37 = vsel %vm1816_vm4, %v1629_v20, %v1133_v36  ;;  %v1633_v45 = vpop.eup %1632 }
0x1a84   :  { %1138 = vrot.lane.b32.xlu0 %v1135_v37, %s1662_s27  ;;  %v651_v46 = vmul.f32 %v1633_v45, %v649_v44  ;;  %vm656_vm3 = vweird.f32 %v1633_v45  ;;  %v1635_v56 = vpop.eup %1634  ;;  %v1136_v58 = vmul.f32 %v1135_v37, %v2041_v15 }
0x1a85   :  { %vm657_vm6 = vmor %vm655_vm5, %vm656_vm3 }
0x1a86   :  { %v652_v47 = vsub.f32 1.0, %v651_v46 }
0x1a88   :  { %v653_v48 = vmul.f32 %v1633_v45, %v652_v47 }
0x1a8a   :  { %v654_v50 = vadd.f32 %v1633_v45, %v653_v48 }
0x1a8c   :  { %v658_v5 = vsel %vm657_vm6, %v1633_v45, %v654_v50 }
0x1a8d   :  { %v663_v55 = vsel %vm660_vm7, %v662_v54, %v658_v5 }
0x1a8e   :  { %v665_v57 = vsel %vm1816_vm4, %v1635_v56, %v663_v55 }
0x1a8f   :  { %v666_v28 = vmul.f32 %v665_v57, %v1979_v1 }
0x1af6   :  { %v1139_v49 = vpop.permute.xlu0 %1138 }
0x1af7   :  { %v1141_v51 = vmul.f32 %v1139_v49, %v1135_v37 }
0x1af9   :  { %1143 = vrot.lane.b32.xlu1 %v1141_v51, %s1663_s28 }
0x1b01   :  { %668 = vrot.lane.b32.xlu1 %v665_v57, %s1662_s27 }
0x1b6b   :  { %v1144_v59 = vpop.permute.xlu1 %1143 }
0x1b6c   :  { %v1146_v60 = vadd.f32 %v1144_v59, %v1136_v58 }
0x1b6e   :  { %1636 = vtanh.f32 %v1146_v60 }
0x1b73   :  { %v669_v3 = vpop.permute.xlu1 %668 }
0x1b74   :  { %v1637_v61 = vpop.eup %1636  ;;  %v671_v4 = vmul.f32 %v669_v3, %v665_v57 }
0x1b75   :  { %1149 = vrot.lane.b32.xlu2 %v1637_v61, %s1662_s27 }
0x1bcf   :  { %v1150_v62 = vpop.permute.xlu2 %1149 }
0x1bd0   :  { %v1152_v63 = vmul.f32 %v1150_v62, %v1135_v37 }
0x1bd2   :  { %1154 = vrot.lane.b32.xlu0 %v1152_v63, %s1663_s28 }
0x1bda   :  { %673 = vrot.lane.b32.xlu0 %v671_v4, %s1663_s28 }
0x1c44   :  { %v1155_v9 = vpop.permute.xlu0 %1154 }
0x1c45   :  { %1509 = vmatmul.msk.f32.vlgmr.msrb.gmra.mxu1 %vm152_vm8, %v1155_v9 }
0x1c4c   :  { %v674_v27 = vpop.permute.xlu0 %673 }
0x1c4d   :  { %v676_v31 = vadd.f32 %v674_v27, %v666_v28 }
0x1cc2   :  { %v1175_v13 = vpop.f32.mrf.mxu1 }
0x1cc3   :  { %v1178_v14 = vadd.f32 %v1175_v13, %v765_v12  ;;  %v1282_v12 = vld [vmem:[%s2160_s7 + $0x8] sm:$0xff]  ;;  %v1281_v13 = vld [vmem:[%s2160_s7] sm:$0xff] }
0x1cc4   :  { %1308 = vmatpush.msra.mxu1 %v1282_v12 }
0x1cc5   :  { %v1510_v11 = vmul.f32 -1.442695, %v1178_v14 }
0x1cc6   :  { %1309 = vmatpush.msra.mxu1 %v1281_v13 }
0x1cc7   :  { %1638 = vpow2.f32 %v1510_v11 }
0x1ccd   :  { %v1639_v15 = vpop.eup %1638 }
0x1cce   :  { %v1183_v21 = vadd.f32 1.0, %v1639_v15 }
0x1cd0   :  { %1640 = vrcp.f32 %v1183_v21  ;;  %v1195_v23 = vand.u32 2147483648, %v1183_v21  ;;  %v1193_v26 = vand.u32 2147483647, %v1183_v21  ;;  %vm1189_vm10 = vweird.f32 %v1183_v21 }
0x1cd1   :  { %1642 = vtanh.f32 %v1178_v14 }
0x1cd2   :  { %v1196_v30 = vor.u32 1.1754944e-38, %v1195_v23  ;;  %vm1194_vm12 = vcmp.eq.f32.partialorder %v1193_v26, 8.507059e+37  ;;  %1644 = vtanh.f32 %v676_v31 }
0x1cd6   :  { %v1641_v22 = vpop.eup %1640 }
0x1cd7   :  { %v1185_v0 = vmul.f32 %v1641_v22, %v1183_v21  ;;  %vm1190_vm9 = vweird.f32 %v1641_v22  ;;  %v1643_v8 = vpop.eup %1642  ;;  %v64_v21 = vshrl.u32 %v58_v16, 7 }
0x1cd8   :  { %vm1191_vm11 = vmor %vm1189_vm10, %vm1190_vm9  ;;  %v1645_v17 = vpop.eup %1644  ;;  %vm1460_vm9 = vcmask 7168  }
0x1cd9   :  { %v1186_v2 = vsub.f32 1.0, %v1185_v0 }
0x1cdb   :  { %v1187_v25 = vmul.f32 %v1641_v22, %v1186_v2 }
0x1cdd   :  { %v1188_v29 = vadd.f32 %v1641_v22, %v1187_v25 }
0x1cdf   :  { %v1192_v32 = vsel %vm1191_vm11, %v1641_v22, %v1188_v29  ;;  %v1521_v22 = vld [vmem:[%s2161_s8] ss:$0 sm:$0xff] }
0x1ce0   :  { %v1197_v33 = vsel %vm1194_vm12, %v1196_v30, %v1192_v32 }
0x1ce1   :  { %v1199_v34 = vsel %vm1816_vm4, %v1643_v8, %v1197_v33 }
0x1ce2   :  { %1202 = vrot.lane.b32.xlu2 %v1199_v34, %s1662_s27  ;;  %v1200_v20 = vmul.f32 %v1199_v34, %v1146_v60 }
0x1cea   :  { %679 = vrot.lane.b32.xlu2 %v1645_v17, %s1662_s27 }
0x1d3c   :  { %v1203_v18 = vpop.permute.xlu2 %1202 }
0x1d3d   :  { %v1205_v1 = vmul.f32 %v1203_v18, %v1199_v34 }
0x1d3f   :  { %1207 = vrot.lane.b32.xlu1 %v1205_v1, %s1663_s28  ;;  %v1360_v1 = vld [vmem:[%s2166_s11 + $0x18] sm:$0xff] }
0x1d40   :  { %1380 = vmatpush.msrb.mxu2 %v1360_v1 }
0x1d44   :  { %v680_v19 = vpop.permute.xlu2 %679 }
0x1d45   :  { %v682_v35 = vmul.f32 %v680_v19, %v665_v57 }
0x1d47   :  { %684 = vrot.lane.b32.xlu1 %v682_v35, %s1663_s28  ;;  %v1359_v35 = vld [vmem:[%s2166_s11 + $0x10] sm:$0xff] }
0x1d48   :  { %1381 = vmatpush.msrb.mxu2 %v1359_v35 }
0x1db1   :  { %v1208_v36 = vpop.permute.xlu1 %1207 }
0x1db2   :  { %v1210_v37 = vadd.f32 %v1208_v36, %v1200_v20  ;;  %v1358_v36 = vld [vmem:[%s2166_s11 + $0x8] sm:$0xff] }
0x1db3   :  { %1382 = vmatpush.msrb.mxu2 %v1358_v36 }
0x1db4   :  { %1646 = vtanh.f32 %v1210_v37 }
0x1db9   :  { %v685_v38 = vpop.permute.xlu1 %684 }
0x1dba   :  { %v1647_v39 = vpop.eup %1646  ;;  %688 = vst.msk [vmem:[#allocation2 + $0x38] sm:$0xff] %vm152_vm8, %v685_v38  ;;  %v1357_v38 = vld [vmem:[%s2166_s11] sm:$0xff] }
0x1dbb   :  { %1213 = vrot.lane.b32.xlu0 %v1647_v39, %s1662_s27  ;;  %1383 = vmatpush.msrb.mxu2 %v1357_v38 }
0x1dc1   :  { %v696_v40 = vld [vmem:[#allocation2 + $0x38] sm:$0xff] }
0x1dc2   :  { %1497 = vmatmul.msk.f32.gmra.mxu3 %vm152_vm8, %v696_v40 }
0x1e2d   :  { %v1214_v41 = vpop.permute.xlu0 %1213 }
0x1e2e   :  { %v1216_v42 = vmul.f32 %v1214_v41, %v1199_v34 }
0x1e30   :  { %1218 = vrot.lane.b32.xlu2 %v1216_v42, %s1663_s28 }
0x1e45   :  { %v767_v44 = vpop.f32.mrf.mxu3 }
0x1e46   :  { %v768_v45 = vadd.f32 %v1967_v6, %v767_v44 }
0x1e8a   :  { %v1219_v43 = vpop.permute.xlu2 %1218 }
0x1e8b   :  { %1511 = vmatmul.msk.f32.vlgmr.msra.gmra.mxu2 %vm152_vm8, %v1219_v43 }
0x1f0e   :  { %v1239_v46 = vpop.f32.mrf.mxu2 }
0x1f0f   :  { %v1242_v47 = vadd.f32 %v1239_v46, %v768_v45 }
0x1f11   :  { %v1512_v48 = vmul.f32 -1.442695, %v1242_v47 }
0x1f13   :  { %1648 = vpow2.f32 %v1512_v48  ;;  %v1522_v48 = vld [vmem:[%s2162_s9] ss:$0 sm:$0xff] }
0x1f19   :  { %v1649_v49 = vpop.eup %1648 }
0x1f1a   :  { %v1247_v50 = vadd.f32 1.0, %v1649_v49 }
0x1f1c   :  { %1650 = vrcp.f32 %v1247_v50  ;;  %v1259_v5 = vand.u32 2147483648, %v1247_v50  ;;  %v1257_v55 = vand.u32 2147483647, %v1247_v50  ;;  %vm1253_vm14 = vweird.f32 %v1247_v50 }
0x1f1d   :  { %1652 = vtanh.f32 %v1242_v47 }
0x1f1e   :  { %v1260_v57 = vor.u32 1.1754944e-38, %v1259_v5  ;;  %vm1258_vm1 = vcmp.eq.f32.partialorder %v1257_v55, 8.507059e+37 }
0x1f22   :  { %v1651_v51 = vpop.eup %1650 }
0x1f23   :  { %v1249_v52 = vmul.f32 %v1651_v51, %v1247_v50  ;;  %vm1254_vm13 = vweird.f32 %v1651_v51  ;;  %v1653_v58 = vpop.eup %1652 }
0x1f24   :  { %vm1255_vm15 = vmor %vm1253_vm14, %vm1254_vm13 }
0x1f25   :  { %v1250_v53 = vsub.f32 1.0, %v1249_v52 }
0x1f27   :  { %v1251_v54 = vmul.f32 %v1651_v51, %v1250_v53 }
0x1f29   :  { %v1252_v56 = vadd.f32 %v1651_v51, %v1251_v54  ;;  %v1524_v54 = vld [vmem:[%s2164_s12] ss:$0 sm:$0xff] }
0x1f2b   :  { %v1256_v6 = vsel %vm1255_vm15, %v1651_v51, %v1252_v56  ;;  %v1523_v51 = vld [vmem:[%s2163_s10] ss:$0 sm:$0xff] }
0x1f2c   :  { %v1261_v59 = vsel %vm1258_vm1, %v1260_v57, %v1256_v6 }
0x1f2d   :  { %v1263_v60 = vsel %vm1816_vm4, %v1653_v58, %v1261_v59  ;;  %vm65_vm4 = vcmp.lt.s32.totalorder %v64_v21, 4 }
0x1f2e   :  { %1266 = vrot.lane.b32.xlu0 %v1263_v60, %s1662_s27  ;;  %v1264_v63 = vmul.f32 %v1263_v60, %v1210_v37  ;;  %v2102_v0 = vsel %vm65_vm4, 1.0, %v1661_v7 }
0x1fa0   :  { %v1267_v61 = vpop.permute.xlu0 %1266 }
0x1fa1   :  { %v1269_v62 = vmul.f32 %v1267_v61, %v1263_v60 }
0x1fa3   :  { %1271 = vrot.lane.b32.xlu1 %v1269_v62, %s1663_s28 }
0x2015   :  { %v1272_v3 = vpop.permute.xlu1 %1271 }
0x2016   :  { %v1274_v4 = vadd.f32 %v1272_v3, %v1264_v63 }
0x2018   :  { %1654 = vtanh.f32 %v1274_v4 }
0x201e   :  { %v1655_v9 = vpop.eup %1654 }
0x201f   :  { %1277 = vrot.lane.b32.xlu2 %v1655_v9, %s1662_s27 }
0x2079   :  { %v1278_v14 = vpop.permute.xlu2 %1277 }
0x207a   :  { %v1280_v11 = vmul.f32 %v1278_v14, %v1263_v60 }
0x207c   :  { %1290 = vrot.lane.b32.xlu0 %v1280_v11, %s1663_s28  ;;  %v1432_v11 = vld [vmem:[%s2168_s15 + $0x8] sm:$0xff] }
0x207d   :  { %1454 = vmatpush.msrb.mxu0 %v1432_v11 }
0x20ee   :  { %v1291_v15 = vpop.permute.xlu0 %1290 }
0x20ef   :  { %1513 = vmatmul.msk.f32.vlgmr.msra.gmra.mxu1 %vm152_vm8, %v1291_v15  ;;  %v1431_v15 = vld [vmem:[%s2168_s15] sm:$0xff] }
0x20f0   :  { %1455 = vmatpush.msrb.mxu0 %v1431_v15 }
0x216c   :  { %v1311_v2 = vpop.f32.mrf.mxu1 }
0x216d   :  { %v1312_v23 = vadd.f32 %v1521_v22, %v1311_v2 }
0x216f   :  { %v1314_v25 = vmul.f32 %v2102_v0, %v1312_v23 }
0x2171   :  { %v1315_v26 = vsel %vm152_vm8, %v1314_v25, 0.0 }
0x2172   :  { %v1316_v27 = vrot.slane %v1315_v26, 4 }
0x2174   :  { %v1317_v28 = vadd.f32 %v1316_v27, %v1315_v26 }
0x2176   :  { %v1318_v29 = vrot.slane %v1317_v28, 2 }
0x2178   :  { %v1319_v30 = vadd.f32 %v1318_v29, %v1317_v28 }
0x217a   :  { %v1320_v31 = vrot.slane %v1319_v30, 1 }
0x217c   :  { %v1321_v16 = vadd.f32 %v1320_v31, %v1319_v30 }
0x217e   :  { %v1322_v32 = vmul.f32 0.25, %v1321_v16  ;;  %v1525_v16 = vld [vmem:[%s2165_s13] ss:$0 sm:$0xff] }
0x2180   :  { %v1323_v8 = vsub.f32 %v1312_v23, %v1322_v32 }
0x2182   :  { %v1324_v33 = vmul.f32 %v2102_v0, %v1323_v8 }
0x2184   :  { %v1325_v34 = vmul.f32 %v1324_v33, %v1324_v33  ;;  %v1526_v33 = vld [vmem:[%s2167_s14] ss:$0 sm:$0xff] }
0x2186   :  { %v1326_v7 = vsel %vm152_vm8, %v1325_v34, 0.0 }
0x2187   :  { %v1327_v17 = vrot.slane %v1326_v7, 4 }
0x2189   :  { %v1328_v18 = vadd.f32 %v1327_v17, %v1326_v7 }
0x218b   :  { %v1329_v19 = vrot.slane %v1328_v18, 2 }
0x218d   :  { %v1330_v20 = vadd.f32 %v1329_v19, %v1328_v18 }
0x218f   :  { %v1331_v37 = vrot.slane %v1330_v20, 1 }
0x2191   :  { %v1332_v39 = vadd.f32 %v1331_v37, %v1330_v20 }
0x2193   :  { %v1333_v40 = vmul.f32 0.25, %v1332_v39 }
0x2195   :  { %v1334_v41 = vadd.f32 1e-05, %v1333_v40 }
0x2197   :  { %1656 = vrsqrt.f32 %v1334_v41  ;;  %vm1341_vm3 = vweird.f32 %v1334_v41 }
0x219d   :  { %v1657_v42 = vpop.eup %1656 }
0x219e   :  { %v1336_v43 = vmul.f32 %v1657_v42, %v1334_v41  ;;  %vm1342_vm2 = vweird.f32 %v1657_v42 }
0x219f   :  { %vm1343_vm5 = vmor %vm1341_vm3, %vm1342_vm2 }
0x21a0   :  { %v1337_v44 = vmul.f32 %v1657_v42, %v1336_v43 }
0x21a2   :  { %v1338_v45 = vmul.f32 0.5, %v1337_v44 }
0x21a4   :  { %v1339_v46 = vsub.f32 1.5, %v1338_v45 }
0x21a6   :  { %v1340_v47 = vmul.f32 %v1657_v42, %v1339_v46 }
0x21a8   :  { %v1344_v49 = vsel %vm1343_vm5, %v1657_v42, %v1340_v47 }
0x21a9   :  { %v1345_v50 = vmul.f32 %v1344_v49, %v1323_v8 }
0x21ab   :  { %v1350_v52 = vmul.f32 %v1522_v48, %v1345_v50 }
0x21ad   :  { %v1355_v53 = vadd.f32 %v1523_v51, %v1350_v52 }
0x21af   :  { %v1356_v5 = vmax.f32 %v1355_v53, 0.0 }
0x21b1   :  { %1514 = vmatmul.msk.f32.vlgmr.msrb.gmra.mxu2 %vm152_vm8, %v1356_v5 }
0x2234   :  { %v1385_v55 = vpop.f32.mrf.mxu2 }
0x2235   :  { %v1386_v56 = vadd.f32 %v1524_v54, %v1385_v55 }
0x2237   :  { %v1388_v57 = vmul.f32 %v2102_v0, %v1386_v56 }
0x2239   :  { %v1389_v6 = vsel %vm82_vm0, %v1388_v57, 0.0 }
0x223a   :  { %v1390_v58 = vrot.slane %v1389_v6, 4 }
0x223c   :  { %v1391_v59 = vadd.f32 %v1390_v58, %v1389_v6 }
0x223e   :  { %v1392_v60 = vrot.slane %v1391_v59, 2 }
0x2240   :  { %v1393_v61 = vadd.f32 %v1392_v60, %v1391_v59 }
0x2242   :  { %v1394_v62 = vrot.slane %v1393_v61, 1 }
0x2244   :  { %v1395_v63 = vadd.f32 %v1394_v62, %v1393_v61 }
0x2246   :  { %v1396_v3 = vmul.f32 0.25, %v1395_v63 }
0x2248   :  { %v1397_v4 = vsub.f32 %v1386_v56, %v1396_v3 }
0x224a   :  { %v1398_v9 = vmul.f32 %v2102_v0, %v1397_v4  ;;  %v22_v0 = vstv %s2169_s16 }
0x224b   :  { %23 = vst [vmem:[#allocation3] sm:$0x1] %v22_v0 }
0x224c   :  { %v1399_v10 = vmul.f32 %v1398_v9, %v1398_v9 }
0x224e   :  { %v1400_v24 = vsel %vm82_vm0, %v1399_v10, 0.0 }
0x224f   :  { %v1401_v12 = vrot.slane %v1400_v24, 4 }
0x2251   :  { %v1402_v13 = vadd.f32 %v1401_v12, %v1400_v24 }
0x2252   :  { %v1527_v18 = vld [vmem:[#allocation3] ss:$0 sm:$0xff] }
0x2253   :  { %v1403_v14 = vrot.slane %v1402_v13, 2 }
0x2255   :  { %v1404_v21 = vadd.f32 %v1403_v14, %v1402_v13 }
0x2257   :  { %v1405_v22 = vrot.slane %v1404_v21, 1 }
0x2259   :  { %v1406_v2 = vadd.f32 %v1405_v22, %v1404_v21 }
0x225b   :  { %v1407_v23 = vmul.f32 0.25, %v1406_v2 }
0x225d   :  { %v1408_v25 = vadd.f32 1e-05, %v1407_v23 }
0x225f   :  { %1658 = vrsqrt.f32 %v1408_v25  ;;  %vm1415_vm6 = vweird.f32 %v1408_v25 }
0x2265   :  { %v1659_v26 = vpop.eup %1658 }
0x2266   :  { %v1410_v27 = vmul.f32 %v1659_v26, %v1408_v25  ;;  %vm1416_vm8 = vweird.f32 %v1659_v26 }
0x2267   :  { %vm1417_vm7 = vmor %vm1415_vm6, %vm1416_vm8 }
0x2268   :  { %v1411_v28 = vmul.f32 %v1659_v26, %v1410_v27 }
0x226a   :  { %v1412_v29 = vmul.f32 0.5, %v1411_v28 }
0x226c   :  { %v1413_v30 = vsub.f32 1.5, %v1412_v29 }
0x226e   :  { %v1414_v31 = vmul.f32 %v1659_v26, %v1413_v30 }
0x2270   :  { %v1418_v32 = vsel %vm1417_vm7, %v1659_v26, %v1414_v31 }
0x2271   :  { %v1419_v8 = vmul.f32 %v1418_v32, %v1397_v4 }
0x2273   :  { %v1424_v34 = vmul.f32 %v1525_v16, %v1419_v8 }
0x2275   :  { %v1429_v7 = vadd.f32 %v1526_v33, %v1424_v34 }
0x2277   :  { %v1430_v17 = vmax.f32 %v1429_v7, 0.0 }
0x2279   :  { %1515 = vmatmul.msk.f32.vlgmr.msrb.gmra.mxu0 %vm82_vm0, %v1430_v17 }
0x22f6   :  { %v1457_v1 = vpop.f32.mrf.mxu0 }
0x22f7   :  { %v1458_v19 = vadd.f32 %v1527_v18, %v1457_v1 }
0x22f9   :  { %1461 = vst.msk [vmem:[%s2170_s17] sm:$0xff] %vm1460_vm9, %v1458_v19 }

</bundles_post_ra>
